<compile_context>
chip_gen: v7x
topology: tpu7x:2x2x1
jax: 0.10.0
libtpu: 0.0.40
codegen_flags: <defaults>
</compile_context>

<pallas_src>
import functools

import jax
import jax.numpy as jnp
from jax.experimental import pallas as pl
from jax.experimental.pallas import tpu as pltpu


_LANE = 128


# ----------------------------------------------------------------------------
# Small helpers
# ----------------------------------------------------------------------------

def _round_up(x, m):
    return ((x + m - 1) // m) * m


def _vmem_cap_bytes():
    """Physical VMEM capacity (generation-aware), conservative fallback."""
    try:
        cap = getattr(pltpu.get_tpu_info(), "vmem_capacity_bytes", None)
        if cap:
            return int(cap)
    except Exception:
        pass
    return 64 << 20   # safe on every generation (v7x has 64 MiB per core)


def _vmem_limit(est_bytes, cap):
    hard = int(cap * 0.85)                       # leave compiler headroom
    return int(min(max(2 * est_bytes + (2 << 20), 16 << 20), hard))


def _pick_row_tile(n_rows, row_bytes, budget):
    """Largest tile dividing n_rows whose double-buffered stripes fit budget."""
    for t in (2048, 1024, 512, 256, 128, 64, 32, 16, 8):
        if n_rows % t == 0 and 2 * t * row_bytes <= budget:
            return t
    return n_rows   # full extent always satisfies the (8,128) rule


def _pick_edge_tiles(n, budget):
    tn_c = [t for t in (1024, 512, 256, 128) if n % t == 0] or [n]
    tm_c = [t for t in (512, 256, 128, 64, 32, 16, 8) if n % t == 0] or [n]
    for tn in tn_c:
        for tm in tm_c:
            if 2 * (6 * tm * tn * 4 + tm * tn * 2) <= budget:
                return tm, tn
    return tm_c[-1], tn_c[-1]   # smallest legal pair (budget best-effort)


def _pad2(a, shape):
    out = jnp.zeros(shape, a.dtype)
    return out.at[: a.shape[0], : a.shape[1]].set(a)


def _store_col_stats(val_f32, stat_ref):
    """Write per-tile column sum / sum-of-squares into a (1, 2, H) block."""
    s = jnp.sum(val_f32, axis=0, keepdims=True)
    ss = jnp.sum(val_f32 * val_f32, axis=0, keepdims=True)
    stat_ref[...] = jnp.concatenate([s, ss], axis=0).reshape(stat_ref.shape)


def _bn_affine(stats, n, gamma_pad, beta_pad):
    """Fold exact full-N batch statistics into a per-column affine (scale, shift)."""
    s = jnp.sum(stats, axis=0)                      # (2, H)
    mean = s[0:1] / n
    var = jnp.maximum(s[1:2] / n - mean * mean, 0.0)  # biased var (PyTorch train)
    rstd = jax.lax.rsqrt(var + 1e-5)
    scale = gamma_pad * rstd
    shift = beta_pad - mean * scale
    return scale.astype(jnp.float32), shift.astype(jnp.float32)


# ----------------------------------------------------------------------------
# Kernel: edge-feature collapse   adj[n,m] = sum_c ef[c] * adj_raw[c,n,m]
# ----------------------------------------------------------------------------

def _edge_collapse_kernel(ef_ref, araw_ref, o_ref):
    acc = ef_ref[0, 0] * araw_ref[0]
    for c in range(1, 6):
        acc = acc + ef_ref[0, c] * araw_ref[c]
    o_ref[...] = acc.astype(o_ref.dtype)


def edge_collapse(adj_raw_cnn, edge_features, cap):
    _, n, _ = adj_raw_cnn.shape
    tm, tn = _pick_edge_tiles(n, int(cap * 0.4))
    ef = jnp.reshape(edge_features, (1, 6)).astype(jnp.float32)
    est = 2 * (6 * tm * tn * 4 + tm * tn * 2)
    return pl.pallas_call(
        _edge_collapse_kernel,
        out_shape=jax.ShapeDtypeStruct((n, n), jnp.bfloat16),
        grid=(n // tm, n // tn),
        in_specs=[
            pl.BlockSpec(memory_space=pltpu.MemorySpace.SMEM),     # edge feats
            pl.BlockSpec((6, tm, tn), lambda i, j: (0, i, j)),
        ],
        out_specs=pl.BlockSpec((tm, tn), lambda i, j: (i, j)),
        compiler_params=pltpu.CompilerParams(
            dimension_semantics=("parallel", "parallel"),
            vmem_limit_bytes=_vmem_limit(est, cap)),
    )(ef, adj_raw_cnn)


# ----------------------------------------------------------------------------
# Kernel: row-tiled matmul   o = a @ w   (prep pass: hW0 = h @ W0)
# ----------------------------------------------------------------------------

def _rows_matmul_kernel(a_ref, w_ref, o_ref):
    o_ref[...] = jnp.dot(a_ref[...], w_ref[...],
                         preferred_element_type=jnp.float32).astype(o_ref.dtype)


def rows_matmul(a, w, cap):
    n, kdim = a.shape
    m = w.shape[1]
    row_bytes = kdim * a.dtype.itemsize + m * 2
    tm = _pick_row_tile(n, row_bytes, int(cap * 0.3))
    est = 2 * tm * row_bytes + kdim * m * w.dtype.itemsize + (1 << 20)
    return pl.pallas_call(
        _rows_matmul_kernel,
        out_shape=jax.ShapeDtypeStruct((n, m), jnp.bfloat16),
        grid=(n // tm,),
        in_specs=[pl.BlockSpec((tm, kdim), lambda i: (i, 0)),
                  pl.BlockSpec((kdim, m), lambda i: (0, 0))],
        out_specs=pl.BlockSpec((tm, m), lambda i: (i, 0)),
        compiler_params=pltpu.CompilerParams(
            dimension_semantics=("parallel",),
            vmem_limit_bytes=_vmem_limit(est, cap)),
    )(a, w)


# ----------------------------------------------------------------------------
# Kernel: pass A  z0 = Adj @ hW0 + eps*hW0 + b0   (+ per-tile BN stat partials)
# ----------------------------------------------------------------------------

def _agg_lin0_kernel(eps_ref, b_ref, adj_ref, hw_ref, z_ref, stat_ref):
    i = pl.program_id(0)
    tm = adj_ref.shape[0]
    row0 = pl.multiple_of(i * tm, tm)
    z = jnp.dot(adj_ref[...], hw_ref[...], preferred_element_type=jnp.float32)
    z = z + eps_ref[0, 0] * hw_ref[pl.ds(row0, tm), :].astype(jnp.float32) + b_ref[...]
    zb = z.astype(z_ref.dtype)
    z_ref[...] = zb
    _store_col_stats(zb.astype(jnp.float32), stat_ref)


def gin_agg_lin0(adj, hw0, eps_scalar, b0, cap):
    n = adj.shape[0]
    hpad = hw0.shape[1]
    resident = n * hpad * 2                         # hW0 kept VMEM-resident (bf16)
    row_bytes = n * 2 + hpad * 2 + 2 * hpad * 4     # adj stripe + z out + stats
    budget = max(int(cap * 0.45) - resident, 32 * row_bytes)
    tm = _pick_row_tile(n, row_bytes, budget)
    ntiles = n // tm
    eps_arr = jnp.reshape(eps_scalar, (1, 1)).astype(jnp.float32)
    est = resident + 2 * tm * row_bytes + (1 << 20)
    return pl.pallas_call(
        _agg_lin0_kernel,
        out_shape=(jax.ShapeDtypeStruct((n, hpad), jnp.bfloat16),
                   jax.ShapeDtypeStruct((ntiles, 2, hpad), jnp.float32)),
        grid=(ntiles,),
        in_specs=[
            pl.BlockSpec(memory_space=pltpu.MemorySpace.SMEM),   # eps scalar
            pl.BlockSpec((1, hpad), lambda i: (0, 0)),           # bias
            pl.BlockSpec((tm, n), lambda i: (i, 0)),             # adj row stripe
            pl.BlockSpec((n, hpad), lambda i: (0, 0)),           # resident hW0
        ],
        out_specs=(pl.BlockSpec((tm, hpad), lambda i: (i, 0)),
                   pl.BlockSpec((1, 2, hpad), lambda i: (i, 0, 0))),
        compiler_params=pltpu.CompilerParams(
            dimension_semantics=("parallel",),
            vmem_limit_bytes=_vmem_limit(est, cap)),
    )(eps_arr, b0, adj, hw0)


# ----------------------------------------------------------------------------
# Kernel: pass B  z_l = relu(BN(z_{l-1})) @ W_l + b_l   (+ stat partials)
# ----------------------------------------------------------------------------

def _bn_relu_lin_kernel(z_ref, scale_ref, shift_ref, w_ref, b_ref, o_ref, stat_ref):
    a = jnp.maximum(z_ref[...].astype(jnp.float32) * scale_ref[...] + shift_ref[...],
                    0.0)
    z = jnp.dot(a.astype(jnp.bfloat16), w_ref[...],
                preferred_element_type=jnp.float32) + b_ref[...]
    zb = z.astype(o_ref.dtype)
    o_ref[...] = zb
    _store_col_stats(zb.astype(jnp.float32), stat_ref)


def gin_bn_relu_lin(z, scale, shift, w, b, cap):
    n, hpad = z.shape
    m = w.shape[1]
    row_bytes = hpad * 2 + m * 2 + 2 * m * 4
    tm = _pick_row_tile(n, row_bytes, int(cap * 0.3))
    ntiles = n // tm
    est = 2 * tm * row_bytes + w.size * 2 + (1 << 20)
    return pl.pallas_call(
        _bn_relu_lin_kernel,
        out_shape=(jax.ShapeDtypeStruct((n, m), jnp.bfloat16),
                   jax.ShapeDtypeStruct((ntiles, 2, m), jnp.float32)),
        grid=(ntiles,),
        in_specs=[pl.BlockSpec((tm, hpad), lambda i: (i, 0)),
                  pl.BlockSpec((1, hpad), lambda i: (0, 0)),
                  pl.BlockSpec((1, hpad), lambda i: (0, 0)),
                  pl.BlockSpec((hpad, m), lambda i: (0, 0)),
                  pl.BlockSpec((1, m), lambda i: (0, 0))],
        out_specs=(pl.BlockSpec((tm, m), lambda i: (i, 0)),
                   pl.BlockSpec((1, 2, m), lambda i: (i, 0, 0))),
        compiler_params=pltpu.CompilerParams(
            dimension_semantics=("parallel",),
            vmem_limit_bytes=_vmem_limit(est, cap)),
    )(z, scale, shift, w, b)


# ----------------------------------------------------------------------------
# Kernel: pass C  h = relu(BN_out(z))  +  fused graph-pool partials
# ----------------------------------------------------------------------------

def _bn_relu_pool_kernel(z_ref, scale_ref, shift_ref, gp_ref, h_ref, pool_ref):
    hv = jnp.maximum(z_ref[...].astype(jnp.float32) * scale_ref[...] + shift_ref[...],
                     0.0)
    h_ref[...] = hv.astype(h_ref.dtype)
    contrib = jax.lax.dot_general(
        gp_ref[...], hv,
        dimension_numbers=(((0,), (0,)), ((), ())),
        preferred_element_type=jnp.float32)                 # (g_pad, hpad)
    pool_ref[...] = contrib.reshape(pool_ref.shape)


def gin_bn_relu_pool(z, scale, shift, gp_t, cap):
    n, hpad = z.shape
    gpad = gp_t.shape[1]
    row_bytes = hpad * 2 + hpad * 2 + gpad * 4
    tm = _pick_row_tile(n, row_bytes, int(cap * 0.3))
    ntiles = n // tm
    est = 2 * tm * row_bytes + (1 << 20)
    return pl.pallas_call(
        _bn_relu_pool_kernel,
        out_shape=(jax.ShapeDtypeStruct((n, hpad), jnp.bfloat16),
                   jax.ShapeDtypeStruct((ntiles, gpad, hpad), jnp.float32)),
        grid=(ntiles,),
        in_specs=[pl.BlockSpec((tm, hpad), lambda i: (i, 0)),
                  pl.BlockSpec((1, hpad), lambda i: (0, 0)),
                  pl.BlockSpec((1, hpad), lambda i: (0, 0)),
                  pl.BlockSpec((tm, gpad), lambda i: (i, 0))],
        out_specs=(pl.BlockSpec((tm, hpad), lambda i: (i, 0)),
                   pl.BlockSpec((1, gpad, hpad), lambda i: (i, 0, 0))),
        compiler_params=pltpu.CompilerParams(
            dimension_semantics=("parallel",),
            vmem_limit_bytes=_vmem_limit(est, cap)),
    )(z, scale, shift, gp_t)


# ----------------------------------------------------------------------------
# Kernel: graph pooling of the raw node features (layer-0 hidden rep)
# ----------------------------------------------------------------------------

def _pool_partial_kernel(gp_ref, x_ref, o_ref):
    contrib = jax.lax.dot_general(
        gp_ref[...], x_ref[...].astype(jnp.float32),
        dimension_numbers=(((0,), (0,)), ((), ())),
        preferred_element_type=jnp.float32)
    o_ref[...] = contrib.reshape(o_ref.shape)


def pool_rows(gp_t, x, cap):
    n, gpad = gp_t.shape
    d = x.shape[1]
    row_bytes = gpad * 4 + d * x.dtype.itemsize
    tm = _pick_row_tile(n, row_bytes, int(cap * 0.25))
    ntiles = n // tm
    est = 2 * tm * row_bytes + (1 << 20)
    parts = pl.pallas_call(
        _pool_partial_kernel,
        out_shape=jax.ShapeDtypeStruct((ntiles, gpad, d), jnp.float32),
        grid=(ntiles,),
        in_specs=[pl.BlockSpec((tm, gpad), lambda i: (i, 0)),
                  pl.BlockSpec((tm, d), lambda i: (i, 0))],
        out_specs=pl.BlockSpec((1, gpad, d), lambda i: (i, 0, 0)),
        compiler_params=pltpu.CompilerParams(
            dimension_semantics=("parallel",),
            vmem_limit_bytes=_vmem_limit(est, cap)),
    )(gp_t, x)
    return jnp.sum(parts, axis=0)


# ----------------------------------------------------------------------------
# Parameters (deterministic, synthetic)
# ----------------------------------------------------------------------------

def init_params(key, num_layers, num_mlp_layers, input_dim, hidden_dim, output_dim):
    keys = iter(jax.random.split(key, 128))

    def nrm(shape, scale=0.1):
        return (scale * jax.random.normal(next(keys), shape)).astype(jnp.float32)

    params = {
        "eps": nrm((num_layers - 1,), 0.01),
        "edge_features": nrm((6,), 0.01),
    }
    # NOTE: self.calc_edges (Linear(6,1)) is unused in the reference forward.

    mlps = []
    for layer in range(num_layers - 1):
        in_dim = input_dim if layer == 0 else hidden_dim
        ws, bs, gs, betas = [], [], [], []
        if num_mlp_layers == 1:
            ws.append(nrm((in_dim, hidden_dim)))
            bs.append(nrm((1, hidden_dim)))
        else:
            dims = [in_dim] + [hidden_dim] * num_mlp_layers
            for l in range(num_mlp_layers):
                ws.append(nrm((dims[l], dims[l + 1])))
                bs.append(nrm((1, dims[l + 1])))
            for _ in range(num_mlp_layers - 1):
                gs.append(jnp.ones((1, hidden_dim), jnp.float32))
                betas.append(jnp.zeros((1, hidden_dim), jnp.float32))
        mlps.append({"w": ws, "b": bs, "bn_gamma": gs, "bn_beta": betas})
    params["mlps"] = mlps

    params["bn_gamma"] = [jnp.ones((1, hidden_dim), jnp.float32)
                          for _ in range(num_layers - 1)]
    params["bn_beta"] = [jnp.zeros((1, hidden_dim), jnp.float32)
                         for _ in range(num_layers - 1)]

    pred_w, pred_b = [], []
    for layer in range(num_layers):
        in_dim = input_dim if layer == 0 else hidden_dim
        pred_w.append(nrm((in_dim, output_dim)))
        pred_b.append(nrm((1, output_dim)))
    params["pred_w"] = pred_w
    params["pred_b"] = pred_b
    return params


# ----------------------------------------------------------------------------
# Forward pass (mirrors GIN_CNN.forward / next_layer_update)
# ----------------------------------------------------------------------------

def gin_cnn_forward(params, x, adj_raw_cnn, graph_pool, *, num_layers,
                    num_mlp_layers):
    cap = _vmem_cap_bytes()
    n, in_dim = x.shape
    g = graph_pool.shape[0]
    gpad = _round_up(max(g, 1), 8)
    if params["mlps"]:
        assert len(params["mlps"][0]["w"]) == num_mlp_layers
        hidden = params["mlps"][0]["w"][-1].shape[1]
    else:
        hidden = in_dim
    hpad = _round_up(hidden, _LANE)

    # graph-pooling matrix transposed to (N, g_pad) so pooling blocks are
    # sublane-tiled (lane dim = g_pad, full extent). Values are 0/1 -> exact.
    gp_t = jnp.zeros((n, gpad), jnp.float32).at[:, :g].set(graph_pool.T)

    # Adj_block = edge-feature collapse of the 6-channel dense adjacency (bf16)
    adj = edge_collapse(adj_raw_cnn, params["edge_features"], cap)

    # layer-0 hidden representation (= x): graph pooling fused in a small kernel
    pooled = [pool_rows(gp_t, x, cap)[:g]]                 # (g, in_dim)

    # TODO(synk): BatchNorm uses training-mode batch statistics (exact over all
    # N rows) while dropout is eval-mode identity; eval-mode BN would need
    # stored running_mean/var.
    h = x.astype(jnp.bfloat16)
    for layer in range(num_layers - 1):
        mlp = params["mlps"][layer]
        in_eff = h.shape[1]

        # prep: reassociated aggregation operand  hW0 = h @ W0   (lane-padded)
        w0p = _pad2(mlp["w"][0].astype(jnp.bfloat16), (in_eff, hpad))
        b0p = _pad2(mlp["b"][0], (1, hpad))
        hw0 = rows_matmul(h, w0p, cap)                     # (n, hpad) bf16

        # pass A: adj stream  ->  z0 (+ exact column stats via per-tile partials)
        z, stats = gin_agg_lin0(adj, hw0, params["eps"][layer], b0p, cap)

        # pass B (per remaining MLP linear): relu(BN(z)) @ W + b
        for l in range(1, num_mlp_layers):
            gmm = _pad2(mlp["bn_gamma"][l - 1], (1, hpad))
            bet = _pad2(mlp["bn_beta"][l - 1], (1, hpad))
            scale, shift = _bn_affine(stats, n, gmm, bet)
            wl = _pad2(mlp["w"][l].astype(jnp.bfloat16), (hpad, hpad))
            blp = _pad2(mlp["b"][l], (1, hpad))
            z, stats = gin_bn_relu_lin(z, scale, shift, wl, blp, cap)

        # pass C: outer BN + ReLU  +  fused graph pooling of the new h
        gmm = _pad2(params["bn_gamma"][layer], (1, hpad))
        bet = _pad2(params["bn_beta"][layer], (1, hpad))
        scale, shift = _bn_affine(stats, n, gmm, bet)
        h, pool_part = gin_bn_relu_pool(z, scale, shift, gp_t, cap)
        pooled.append(jnp.sum(pool_part, axis=0)[:g])      # (g, hpad)

    # prediction head: tiny (g, d) @ (d, out) matmuls + accumulation in XLA.
    # TODO(synk): F.dropout on the prediction head is eval-mode identity here.
    score = pooled[0] @ params["pred_w"][0] + params["pred_b"][0]
    for layer in range(1, num_layers):
        wp = _pad2(params["pred_w"][layer],
                   (hpad, params["pred_w"][layer].shape[1]))
        score = score + pooled[layer] @ wp + params["pred_b"][layer]
    return score


# ----------------------------------------------------------------------------
# Main
# ----------------------------------------------------------------------------

if __name__ == "__main__":
    num_layers = 3
    num_mlp_layers = 2
    input_dim = 8
    hidden_dim = 32
    output_dim = 4
    final_dropout = 0.5  # unused at eval time

    num_graphs = 2
    nodes_per_graph = 8
    N = num_graphs * nodes_per_graph

    key = jax.random.PRNGKey(0)
    kp, kx, ka = jax.random.split(key, 3)

    params = init_params(kp, num_layers, num_mlp_layers,
                         input_dim, hidden_dim, output_dim)

    # Node features; dense adjacency with 6 edge-feature channels, generated
    # channel-leading (6, N, N); graph sum-pooling matrix.
    x = jax.random.normal(kx, (N, input_dim), dtype=jnp.float32)
    adj_raw_cnn = jax.random.uniform(ka, (6, N, N), dtype=jnp.float32)
    graph_pool = jnp.zeros((num_graphs, N), jnp.float32)
    for gi in range(num_graphs):
        graph_pool = graph_pool.at[
            gi, gi * nodes_per_graph:(gi + 1) * nodes_per_graph].set(1.0)

    fwd = jax.jit(functools.partial(gin_cnn_forward,
                                    num_layers=num_layers,
                                    num_mlp_layers=num_mlp_layers))
    out = fwd(params, x, adj_raw_cnn, graph_pool)
    out = jax.block_until_ready(out)
    assert out.shape == (num_graphs, output_dim)
    assert bool(jnp.all(jnp.isfinite(out)))
    print("KERNEL_OK")
</pallas_src>

<mosaic_0001>
module attributes {stable_mosaic.version = 11 : i64} {
  func.func @_pool_partial_kernel(%arg0: i32, %arg1: memref<16x8xf32, #tpu.memory_space<vmem>>, %arg2: memref<16x8xf32, #tpu.memory_space<vmem>>, %arg3: memref<1x8x8xf32, #tpu.memory_space<vmem>>) attributes {dimension_semantics = [#tpu.dimension_semantics<parallel>], iteration_bounds = array<i64: 1>, scalar_prefetch = 0 : i64, scratch_operands = 0 : i64, tpu.core_type = #tpu.core_type<tc>, window_params = [{transform_indices = @transform_0, window_bounds = array<i64: 16, 8>}, {transform_indices = @transform_1, window_bounds = array<i64: 16, 8>}, {transform_indices = @transform_2, window_bounds = array<i64: 1, 8, 8>}]} {
    %c0 = arith.constant 0 : index
    %c0_0 = arith.constant 0 : index
    %0 = vector.load %arg1[%c0, %c0_0] : memref<16x8xf32, #tpu.memory_space<vmem>>, vector<16x8xf32>
    %c0_1 = arith.constant 0 : index
    %c0_2 = arith.constant 0 : index
    %1 = vector.load %arg2[%c0_1, %c0_2] : memref<16x8xf32, #tpu.memory_space<vmem>>, vector<16x8xf32>
    %cst = arith.constant dense<0.000000e+00> : vector<8x8xf32>
    %2 = tpu.matmul %0, %1, %cst {dimension_numbers = #tpu.dot_dimension_numbers<[0], [0], [1], [1], [0, 1, 1, 1], [], []>} : vector<16x8xf32>, vector<16x8xf32>, vector<8x8xf32> -> vector<8x8xf32>
    %3 = vector.shape_cast %2 : vector<8x8xf32> to vector<1x8x8xf32>
    %c0_3 = arith.constant 0 : index
    %c0_4 = arith.constant 0 : index
    %c0_5 = arith.constant 0 : index
    %4 = vector.load %arg3[%c0_3, %c0_4, %c0_5] : memref<1x8x8xf32, #tpu.memory_space<vmem>>, vector<1x8x8xf32>
    tpu.vector_store %arg3[%c0_3, %c0_4, %c0_5], %3 {strides = array<i32>} : memref<1x8x8xf32, #tpu.memory_space<vmem>>, vector<1x8x8xf32>,
    return
  }
  func.func @transform_0(%arg0: i32) -> (i32, i32) {
    %c0_i32 = arith.constant 0 : i32
    %c0_i32_0 = arith.constant 0 : i32
    return %arg0, %c0_i32 : i32, i32
  }
  func.func @transform_1(%arg0: i32) -> (i32, i32) {
    %c0_i32 = arith.constant 0 : i32
    %c0_i32_0 = arith.constant 0 : i32
    return %arg0, %c0_i32 : i32, i32
  }
  func.func @transform_2(%arg0: i32) -> (i32, i32, i32) {
    %c0_i32 = arith.constant 0 : i32
    %c0_i32_0 = arith.constant 0 : i32
    %c0_i32_1 = arith.constant 0 : i32
    return %arg0, %c0_i32, %c0_i32_0 : i32, i32, i32
  }
}

module attributes {stable_mosaic.version = 11 : i64} {
  func.func @_edge_collapse_kernel(%arg0: i32, %arg1: i32, %arg2: memref<1x6xf32, #tpu.memory_space<smem>>, %arg3: memref<6x16x16xf32, #tpu.memory_space<vmem>>, %arg4: memref<16x16xbf16, #tpu.memory_space<vmem>>) attributes {dimension_semantics = [#tpu.dimension_semantics<parallel>, #tpu.dimension_semantics<parallel>], iteration_bounds = array<i64: 1, 1>, scalar_prefetch = 0 : i64, scratch_operands = 0 : i64, tpu.core_type = #tpu.core_type<tc>, window_params = [{transform_indices = @transform_0, window_bounds = array<i64: 1, 6>}, {transform_indices = @transform_1, window_bounds = array<i64: 6, 16, 16>}, {transform_indices = @transform_2, window_bounds = array<i64: 16, 16>}]} {
    %c0 = arith.constant 0 : index
    %c0_0 = arith.constant 0 : index
    %0 = memref.load %arg2[%c0, %c0_0] : memref<1x6xf32, #tpu.memory_space<smem>>
    %c0_1 = arith.constant 0 : index
    %c0_2 = arith.constant 0 : index
    %c0_3 = arith.constant 0 : index
    %1 = vector.load %arg3[%c0_1, %c0_2, %c0_3] : memref<6x16x16xf32, #tpu.memory_space<vmem>>, vector<1x16x16xf32>
    %2 = vector.shape_cast %1 : vector<1x16x16xf32> to vector<16x16xf32>
    %3 = vector.broadcast %0 : f32 to vector<16x16xf32>
    %4 = arith.mulf %3, %2 : vector<16x16xf32>
    %c0_4 = arith.constant 0 : index
    %c1 = arith.constant 1 : index
    %5 = memref.load %arg2[%c0_4, %c1] : memref<1x6xf32, #tpu.memory_space<smem>>
    %c1_5 = arith.constant 1 : index
    %c0_6 = arith.constant 0 : index
    %c0_7 = arith.constant 0 : index
    %6 = vector.load %arg3[%c1_5, %c0_6, %c0_7] : memref<6x16x16xf32, #tpu.memory_space<vmem>>, vector<1x16x16xf32>
    %7 = vector.shape_cast %6 : vector<1x16x16xf32> to vector<16x16xf32>
    %8 = vector.broadcast %5 : f32 to vector<16x16xf32>
    %9 = arith.mulf %8, %7 : vector<16x16xf32>
    %10 = arith.addf %4, %9 : vector<16x16xf32>
    %c0_8 = arith.constant 0 : index
    %c2 = arith.constant 2 : index
    %11 = memref.load %arg2[%c0_8, %c2] : memref<1x6xf32, #tpu.memory_space<smem>>
    %c2_9 = arith.constant 2 : index
    %c0_10 = arith.constant 0 : index
    %c0_11 = arith.constant 0 : index
    %12 = vector.load %arg3[%c2_9, %c0_10, %c0_11] : memref<6x16x16xf32, #tpu.memory_space<vmem>>, vector<1x16x16xf32>
    %13 = vector.shape_cast %12 : vector<1x16x16xf32> to vector<16x16xf32>
    %14 = vector.broadcast %11 : f32 to vector<16x16xf32>
    %15 = arith.mulf %14, %13 : vector<16x16xf32>
    %16 = arith.addf %10, %15 : vector<16x16xf32>
    %c0_12 = arith.constant 0 : index
    %c3 = arith.constant 3 : index
    %17 = memref.load %arg2[%c0_12, %c3] : memref<1x6xf32, #tpu.memory_space<smem>>
    %c3_13 = arith.constant 3 : index
    %c0_14 = arith.constant 0 : index
    %c0_15 = arith.constant 0 : index
    %18 = vector.load %arg3[%c3_13, %c0_14, %c0_15] : memref<6x16x16xf32, #tpu.memory_space<vmem>>, vector<1x16x16xf32>
    %19 = vector.shape_cast %18 : vector<1x16x16xf32> to vector<16x16xf32>
    %20 = vector.broadcast %17 : f32 to vector<16x16xf32>
    %21 = arith.mulf %20, %19 : vector<16x16xf32>
    %22 = arith.addf %16, %21 : vector<16x16xf32>
    %c0_16 = arith.constant 0 : index
    %c4 = arith.constant 4 : index
    %23 = memref.load %arg2[%c0_16, %c4] : memref<1x6xf32, #tpu.memory_space<smem>>
    %c4_17 = arith.constant 4 : index
    %c0_18 = arith.constant 0 : index
    %c0_19 = arith.constant 0 : index
    %24 = vector.load %arg3[%c4_17, %c0_18, %c0_19] : memref<6x16x16xf32, #tpu.memory_space<vmem>>, vector<1x16x16xf32>
    %25 = vector.shape_cast %24 : vector<1x16x16xf32> to vector<16x16xf32>
    %26 = vector.broadcast %23 : f32 to vector<16x16xf32>
    %27 = arith.mulf %26, %25 : vector<16x16xf32>
    %28 = arith.addf %22, %27 : vector<16x16xf32>
    %c0_20 = arith.constant 0 : index
    %c5 = arith.constant 5 : index
    %29 = memref.load %arg2[%c0_20, %c5] : memref<1x6xf32, #tpu.memory_space<smem>>
    %c5_21 = arith.constant 5 : index
    %c0_22 = arith.constant 0 : index
    %c0_23 = arith.constant 0 : index
    %30 = vector.load %arg3[%c5_21, %c0_22, %c0_23] : memref<6x16x16xf32, #tpu.memory_space<vmem>>, vector<1x16x16xf32>
    %31 = vector.shape_cast %30 : vector<1x16x16xf32> to vector<16x16xf32>
    %32 = vector.broadcast %29 : f32 to vector<16x16xf32>
    %33 = arith.mulf %32, %31 : vector<16x16xf32>
    %34 = arith.addf %28, %33 : vector<16x16xf32>
    %35 = arith.truncf %34 : vector<16x16xf32> to vector<16x16xbf16>
    %c0_24 = arith.constant 0 : index
    %c0_25 = arith.constant 0 : index
    %36 = vector.load %arg4[%c0_24, %c0_25] : memref<16x16xbf16, #tpu.memory_space<vmem>>, vector<16x16xbf16>
    tpu.vector_store %arg4[%c0_24, %c0_25], %35 {strides = array<i32>} : memref<16x16xbf16, #tpu.memory_space<vmem>>, vector<16x16xbf16>,
    return
  }
  func.func @transform_0(%arg0: i32, %arg1: i32) -> (i32, i32) {
    %c0_i32 = arith.constant 0 : i32
    %c0_i32_0 = arith.constant 0 : i32
    %c0_i32_1 = arith.constant 0 : i32
    return %c0_i32, %c0_i32_0 : i32, i32
  }
  func.func @transform_1(%arg0: i32, %arg1: i32) -> (i32, i32, i32) {
    %c0_i32 = arith.constant 0 : i32
    %c0_i32_0 = arith.constant 0 : i32
    return %c0_i32, %arg0, %arg1 : i32, i32, i32
  }
  func.func @transform_2(%arg0: i32, %arg1: i32) -> (i32, i32) {
    %c0_i32 = arith.constant 0 : i32
    return %arg0, %arg1 : i32, i32
  }
}

module attributes {stable_mosaic.version = 11 : i64} {
  func.func @_rows_matmul_kernel(%arg0: i32, %arg1: memref<16x8xbf16, #tpu.memory_space<vmem>>, %arg2: memref<8x128xbf16, #tpu.memory_space<vmem>>, %arg3: memref<16x128xbf16, #tpu.memory_space<vmem>>) attributes {dimension_semantics = [#tpu.dimension_semantics<parallel>], iteration_bounds = array<i64: 1>, scalar_prefetch = 0 : i64, scratch_operands = 0 : i64, tpu.core_type = #tpu.core_type<tc>, window_params = [{transform_indices = @transform_0, window_bounds = array<i64: 16, 8>}, {pipeline_mode = #tpu.pipeline_mode<synchronous>, transform_indices = @transform_1, window_bounds = array<i64: 8, 128>}, {transform_indices = @transform_2, window_bounds = array<i64: 16, 128>}]} {
    %c0 = arith.constant 0 : index
    %c0_0 = arith.constant 0 : index
    %0 = vector.load %arg1[%c0, %c0_0] : memref<16x8xbf16, #tpu.memory_space<vmem>>, vector<16x8xbf16>
    %c0_1 = arith.constant 0 : index
    %c0_2 = arith.constant 0 : index
    %1 = vector.load %arg2[%c0_1, %c0_2] : memref<8x128xbf16, #tpu.memory_space<vmem>>, vector<8x128xbf16>
    %cst = arith.constant dense<0.000000e+00> : vector<16x128xf32>
    %2 = tpu.matmul %0, %1, %cst {dimension_numbers = #tpu.dot_dimension_numbers<[1], [0], [0], [1], [0, 0, 1, 1], [], []>} : vector<16x8xbf16>, vector<8x128xbf16>, vector<16x128xf32> -> vector<16x128xf32>
    %3 = arith.truncf %2 : vector<16x128xf32> to vector<16x128xbf16>
    %c0_3 = arith.constant 0 : index
    %c0_4 = arith.constant 0 : index
    %4 = vector.load %arg3[%c0_3, %c0_4] : memref<16x128xbf16, #tpu.memory_space<vmem>>, vector<16x128xbf16>
    tpu.vector_store %arg3[%c0_3, %c0_4], %3 {strides = array<i32>} : memref<16x128xbf16, #tpu.memory_space<vmem>>, vector<16x128xbf16>,
    return
  }
  func.func @transform_0(%arg0: i32) -> (i32, i32) {
    %c0_i32 = arith.constant 0 : i32
    %c0_i32_0 = arith.constant 0 : i32
    return %arg0, %c0_i32 : i32, i32
  }
  func.func @transform_1(%arg0: i32) -> (i32, i32) {
    %c0_i32 = arith.constant 0 : i32
    %c0_i32_0 = arith.constant 0 : i32
    %c0_i32_1 = arith.constant 0 : i32
    return %c0_i32, %c0_i32_0 : i32, i32
  }
  func.func @transform_2(%arg0: i32) -> (i32, i32) {
    %c0_i32 = arith.constant 0 : i32
    %c0_i32_0 = arith.constant 0 : i32
    return %arg0, %c0_i32 : i32, i32
  }
}

module attributes {stable_mosaic.version = 11 : i64} {
  func.func @_agg_lin0_kernel(%arg0: i32, %arg1: memref<1x1xf32, #tpu.memory_space<smem>>, %arg2: memref<1x128xf32, #tpu.memory_space<vmem>>, %arg3: memref<16x16xbf16, #tpu.memory_space<vmem>>, %arg4: memref<16x128xbf16, #tpu.memory_space<vmem>>, %arg5: memref<16x128xbf16, #tpu.memory_space<vmem>>, %arg6: memref<1x2x128xf32, #tpu.memory_space<vmem>>) attributes {dimension_semantics = [#tpu.dimension_semantics<parallel>], iteration_bounds = array<i64: 1>, scalar_prefetch = 0 : i64, scratch_operands = 0 : i64, tpu.core_type = #tpu.core_type<tc>, window_params = [{transform_indices = @transform_0, window_bounds = array<i64: 1, 1>}, {pipeline_mode = #tpu.pipeline_mode<synchronous>, transform_indices = @transform_1, window_bounds = array<i64: 1, 128>}, {transform_indices = @transform_2, window_bounds = array<i64: 16, 16>}, {pipeline_mode = #tpu.pipeline_mode<synchronous>, transform_indices = @transform_3, window_bounds = array<i64: 16, 128>}, {transform_indices = @transform_4, window_bounds = array<i64: 16, 128>}, {transform_indices = @transform_5, window_bounds = array<i64: 1, 2, 128>}]} {
    %c16_i32 = arith.constant 16 : i32
    %0 = arith.muli %arg0, %c16_i32 : i32
    %1 = tpu.assume_multiple %0, 16 : i32
    %c0 = arith.constant 0 : index
    %c0_0 = arith.constant 0 : index
    %2 = vector.load %arg3[%c0, %c0_0] : memref<16x16xbf16, #tpu.memory_space<vmem>>, vector<16x16xbf16>
    %c0_1 = arith.constant 0 : index
    %c0_2 = arith.constant 0 : index
    %3 = vector.load %arg4[%c0_1, %c0_2] : memref<16x128xbf16, #tpu.memory_space<vmem>>, vector<16x128xbf16>
    %cst = arith.constant dense<0.000000e+00> : vector<16x128xf32>
    %4 = tpu.matmul %2, %3, %cst {dimension_numbers = #tpu.dot_dimension_numbers<[1], [0], [0], [1], [0, 0, 1, 1], [], []>} : vector<16x16xbf16>, vector<16x128xbf16>, vector<16x128xf32> -> vector<16x128xf32>
    %c0_3 = arith.constant 0 : index
    %c0_4 = arith.constant 0 : index
    %5 = memref.load %arg1[%c0_3, %c0_4] : memref<1x1xf32, #tpu.memory_space<smem>>
    %6 = arith.index_cast %1 : i32 to index
    %c0_5 = arith.constant 0 : index
    %7 = vector.load %arg4[%6, %c0_5] : memref<16x128xbf16, #tpu.memory_space<vmem>>, vector<16x128xbf16>
    %8 = arith.extf %7 : vector<16x128xbf16> to vector<16x128xf32>
    %9 = vector.broadcast %5 : f32 to vector<16x128xf32>
    %10 = arith.mulf %9, %8 : vector<16x128xf32>
    %11 = arith.addf %4, %10 : vector<16x128xf32>
    %c0_6 = arith.constant 0 : index
    %c0_7 = arith.constant 0 : index
    %12 = vector.load %arg2[%c0_6, %c0_7] : memref<1x128xf32, #tpu.memory_space<vmem>>, vector<1x128xf32>
    %13 = vector.broadcast %12 : vector<1x128xf32> to vector<16x128xf32>
    %14 = arith.addf %11, %13 : vector<16x128xf32>
    %15 = arith.truncf %14 : vector<16x128xf32> to vector<16x128xbf16>
    %c0_8 = arith.constant 0 : index
    %c0_9 = arith.constant 0 : index
    %16 = vector.load %arg5[%c0_8, %c0_9] : memref<16x128xbf16, #tpu.memory_space<vmem>>, vector<16x128xbf16>
    tpu.vector_store %arg5[%c0_8, %c0_9], %15 {strides = array<i32>} : memref<16x128xbf16, #tpu.memory_space<vmem>>, vector<16x128xbf16>,
    %17 = arith.extf %15 : vector<16x128xbf16> to vector<16x128xf32>
    %cst_10 = arith.constant dense<0.000000e+00> : vector<128xf32>
    %18 = vector.multi_reduction <add>, %17, %cst_10 [0] : vector<16x128xf32> to vector<128xf32>
    %19 = vector.shape_cast %18 : vector<128xf32> to vector<1x128xf32>
    %20 = arith.mulf %17, %17 : vector<16x128xf32>
    %cst_11 = arith.constant dense<0.000000e+00> : vector<128xf32>
    %21 = vector.multi_reduction <add>, %20, %cst_11 [0] : vector<16x128xf32> to vector<128xf32>
    %22 = vector.shape_cast %21 : vector<128xf32> to vector<1x128xf32>
    %23 = tpu.concatenate %19, %22 in 0 : vector<1x128xf32>, vector<1x128xf32> -> vector<2x128xf32>
    %24 = vector.shape_cast %23 : vector<2x128xf32> to vector<1x2x128xf32>
    %c0_12 = arith.constant 0 : index
    %c0_13 = arith.constant 0 : index
    %c0_14 = arith.constant 0 : index
    %25 = vector.load %arg6[%c0_12, %c0_13, %c0_14] : memref<1x2x128xf32, #tpu.memory_space<vmem>>, vector<1x2x128xf32>
    tpu.vector_store %arg6[%c0_12, %c0_13, %c0_14], %24 {strides = array<i32>} : memref<1x2x128xf32, #tpu.memory_space<vmem>>, vector<1x2x128xf32>,
    return
  }
  func.func @transform_0(%arg0: i32) -> (i32, i32) {
    %c0_i32 = arith.constant 0 : i32
    %c0_i32_0 = arith.constant 0 : i32
    %c0_i32_1 = arith.constant 0 : i32
    return %c0_i32, %c0_i32_0 : i32, i32
  }
  func.func @transform_1(%arg0: i32) -> (i32, i32) {
    %c0_i32 = arith.constant 0 : i32
    %c0_i32_0 = arith.constant 0 : i32
    %c0_i32_1 = arith.constant 0 : i32
    return %c0_i32, %c0_i32_0 : i32, i32
  }
  func.func @transform_2(%arg0: i32) -> (i32, i32) {
    %c0_i32 = arith.constant 0 : i32
    %c0_i32_0 = arith.constant 0 : i32
    return %arg0, %c0_i32 : i32, i32
  }
  func.func @transform_3(%arg0: i32) -> (i32, i32) {
    %c0_i32 = arith.constant 0 : i32
    %c0_i32_0 = arith.constant 0 : i32
    %c0_i32_1 = arith.constant 0 : i32
    return %c0_i32, %c0_i32_0 : i32, i32
  }
  func.func @transform_4(%arg0: i32) -> (i32, i32) {
    %c0_i32 = arith.constant 0 : i32
    %c0_i32_0 = arith.constant 0 : i32
    return %arg0, %c0_i32 : i32, i32
  }
  func.func @transform_5(%arg0: i32) -> (i32, i32, i32) {
    %c0_i32 = arith.constant 0 : i32
    %c0_i32_0 = arith.constant 0 : i32
    %c0_i32_1 = arith.constant 0 : i32
    return %arg0, %c0_i32, %c0_i32_0 : i32, i32, i32
  }
}

module attributes {stable_mosaic.version = 11 : i64} {
  func.func @_bn_relu_pool_kernel(%arg0: i32, %arg1: memref<16x128xbf16, #tpu.memory_space<vmem>>, %arg2: memref<1x128xf32, #tpu.memory_space<vmem>>, %arg3: memref<1x128xf32, #tpu.memory_space<vmem>>, %arg4: memref<16x8xf32, #tpu.memory_space<vmem>>, %arg5: memref<16x128xbf16, #tpu.memory_space<vmem>>, %arg6: memref<1x8x128xf32, #tpu.memory_space<vmem>>) attributes {dimension_semantics = [#tpu.dimension_semantics<parallel>], iteration_bounds = array<i64: 1>, scalar_prefetch = 0 : i64, scratch_operands = 0 : i64, tpu.core_type = #tpu.core_type<tc>, window_params = [{transform_indices = @transform_0, window_bounds = array<i64: 16, 128>}, {pipeline_mode = #tpu.pipeline_mode<synchronous>, transform_indices = @transform_1, window_bounds = array<i64: 1, 128>}, {pipeline_mode = #tpu.pipeline_mode<synchronous>, transform_indices = @transform_2, window_bounds = array<i64: 1, 128>}, {transform_indices = @transform_3, window_bounds = array<i64: 16, 8>}, {transform_indices = @transform_4, window_bounds = array<i64: 16, 128>}, {transform_indices = @transform_5, window_bounds = array<i64: 1, 8, 128>}]} {
    %c0 = arith.constant 0 : index
    %c0_0 = arith.constant 0 : index
    %0 = vector.load %arg1[%c0, %c0_0] : memref<16x128xbf16, #tpu.memory_space<vmem>>, vector<16x128xbf16>
    %1 = arith.extf %0 : vector<16x128xbf16> to vector<16x128xf32>
    %c0_1 = arith.constant 0 : index
    %c0_2 = arith.constant 0 : index
    %2 = vector.load %arg2[%c0_1, %c0_2] : memref<1x128xf32, #tpu.memory_space<vmem>>, vector<1x128xf32>
    %3 = vector.broadcast %2 : vector<1x128xf32> to vector<16x128xf32>
    %4 = arith.mulf %1, %3 : vector<16x128xf32>
    %c0_3 = arith.constant 0 : index
    %c0_4 = arith.constant 0 : index
    %5 = vector.load %arg3[%c0_3, %c0_4] : memref<1x128xf32, #tpu.memory_space<vmem>>, vector<1x128xf32>
    %6 = vector.broadcast %5 : vector<1x128xf32> to vector<16x128xf32>
    %7 = arith.addf %4, %6 : vector<16x128xf32>
    %cst = arith.constant 0.000000e+00 : f32
    %8 = vector.broadcast %cst : f32 to vector<16x128xf32>
    %9 = arith.maximumf %7, %8 : vector<16x128xf32>
    %10 = arith.truncf %9 : vector<16x128xf32> to vector<16x128xbf16>
    %c0_5 = arith.constant 0 : index
    %c0_6 = arith.constant 0 : index
    %11 = vector.load %arg5[%c0_5, %c0_6] : memref<16x128xbf16, #tpu.memory_space<vmem>>, vector<16x128xbf16>
    tpu.vector_store %arg5[%c0_5, %c0_6], %10 {strides = array<i32>} : memref<16x128xbf16, #tpu.memory_space<vmem>>, vector<16x128xbf16>,
    %c0_7 = arith.constant 0 : index
    %c0_8 = arith.constant 0 : index
    %12 = vector.load %arg4[%c0_7, %c0_8] : memref<16x8xf32, #tpu.memory_space<vmem>>, vector<16x8xf32>
    %cst_9 = arith.constant dense<0.000000e+00> : vector<8x128xf32>
    %13 = tpu.matmul %12, %9, %cst_9 {dimension_numbers = #tpu.dot_dimension_numbers<[0], [0], [1], [1], [0, 1, 1, 1], [], []>} : vector<16x8xf32>, vector<16x128xf32>, vector<8x128xf32> -> vector<8x128xf32>
    %14 = vector.shape_cast %13 : vector<8x128xf32> to vector<1x8x128xf32>
    %c0_10 = arith.constant 0 : index
    %c0_11 = arith.constant 0 : index
    %c0_12 = arith.constant 0 : index
    %15 = vector.load %arg6[%c0_10, %c0_11, %c0_12] : memref<1x8x128xf32, #tpu.memory_space<vmem>>, vector<1x8x128xf32>
    tpu.vector_store %arg6[%c0_10, %c0_11, %c0_12], %14 {strides = array<i32>} : memref<1x8x128xf32, #tpu.memory_space<vmem>>, vector<1x8x128xf32>,
    return
  }
  func.func @transform_0(%arg0: i32) -> (i32, i32) {
    %c0_i32 = arith.constant 0 : i32
    %c0_i32_0 = arith.constant 0 : i32
    return %arg0, %c0_i32 : i32, i32
  }
  func.func @transform_1(%arg0: i32) -> (i32, i32) {
    %c0_i32 = arith.constant 0 : i32
    %c0_i32_0 = arith.constant 0 : i32
    %c0_i32_1 = arith.constant 0 : i32
    return %c0_i32, %c0_i32_0 : i32, i32
  }
  func.func @transform_2(%arg0: i32) -> (i32, i32) {
    %c0_i32 = arith.constant 0 : i32
    %c0_i32_0 = arith.constant 0 : i32
    %c0_i32_1 = arith.constant 0 : i32
    return %c0_i32, %c0_i32_0 : i32, i32
  }
  func.func @transform_3(%arg0: i32) -> (i32, i32) {
    %c0_i32 = arith.constant 0 : i32
    %c0_i32_0 = arith.constant 0 : i32
    return %arg0, %c0_i32 : i32, i32
  }
  func.func @transform_4(%arg0: i32) -> (i32, i32) {
    %c0_i32 = arith.constant 0 : i32
    %c0_i32_0 = arith.constant 0 : i32
    return %arg0, %c0_i32 : i32, i32
  }
  func.func @transform_5(%arg0: i32) -> (i32, i32, i32) {
    %c0_i32 = arith.constant 0 : i32
    %c0_i32_0 = arith.constant 0 : i32
    %c0_i32_1 = arith.constant 0 : i32
    return %arg0, %c0_i32, %c0_i32_0 : i32, i32, i32
  }
}

module attributes {stable_mosaic.version = 11 : i64} {
  func.func @_bn_relu_lin_kernel(%arg0: i32, %arg1: memref<16x128xbf16, #tpu.memory_space<vmem>>, %arg2: memref<1x128xf32, #tpu.memory_space<vmem>>, %arg3: memref<1x128xf32, #tpu.memory_space<vmem>>, %arg4: memref<128x128xbf16, #tpu.memory_space<vmem>>, %arg5: memref<1x128xf32, #tpu.memory_space<vmem>>, %arg6: memref<16x128xbf16, #tpu.memory_space<vmem>>, %arg7: memref<1x2x128xf32, #tpu.memory_space<vmem>>) attributes {dimension_semantics = [#tpu.dimension_semantics<parallel>], iteration_bounds = array<i64: 1>, scalar_prefetch = 0 : i64, scratch_operands = 0 : i64, tpu.core_type = #tpu.core_type<tc>, window_params = [{transform_indices = @transform_0, window_bounds = array<i64: 16, 128>}, {pipeline_mode = #tpu.pipeline_mode<synchronous>, transform_indices = @transform_1, window_bounds = array<i64: 1, 128>}, {pipeline_mode = #tpu.pipeline_mode<synchronous>, transform_indices = @transform_2, window_bounds = array<i64: 1, 128>}, {pipeline_mode = #tpu.pipeline_mode<synchronous>, transform_indices = @transform_3, window_bounds = array<i64: 128, 128>}, {pipeline_mode = #tpu.pipeline_mode<synchronous>, transform_indices = @transform_4, window_bounds = array<i64: 1, 128>}, {transform_indices = @transform_5, window_bounds = array<i64: 16, 128>}, {transform_indices = @transform_6, window_bounds = array<i64: 1, 2, 128>}]} {
    %c0 = arith.constant 0 : index
    %c0_0 = arith.constant 0 : index
    %0 = vector.load %arg1[%c0, %c0_0] : memref<16x128xbf16, #tpu.memory_space<vmem>>, vector<16x128xbf16>
    %1 = arith.extf %0 : vector<16x128xbf16> to vector<16x128xf32>
    %c0_1 = arith.constant 0 : index
    %c0_2 = arith.constant 0 : index
    %2 = vector.load %arg2[%c0_1, %c0_2] : memref<1x128xf32, #tpu.memory_space<vmem>>, vector<1x128xf32>
    %3 = vector.broadcast %2 : vector<1x128xf32> to vector<16x128xf32>
    %4 = arith.mulf %1, %3 : vector<16x128xf32>
    %c0_3 = arith.constant 0 : index
    %c0_4 = arith.constant 0 : index
    %5 = vector.load %arg3[%c0_3, %c0_4] : memref<1x128xf32, #tpu.memory_space<vmem>>, vector<1x128xf32>
    %6 = vector.broadcast %5 : vector<1x128xf32> to vector<16x128xf32>
    %7 = arith.addf %4, %6 : vector<16x128xf32>
    %cst = arith.constant 0.000000e+00 : f32
    %8 = vector.broadcast %cst : f32 to vector<16x128xf32>
    %9 = arith.maximumf %7, %8 : vector<16x128xf32>
    %10 = arith.truncf %9 : vector<16x128xf32> to vector<16x128xbf16>
    %c0_5 = arith.constant 0 : index
    %c0_6 = arith.constant 0 : index
    %11 = vector.load %arg4[%c0_5, %c0_6] : memref<128x128xbf16, #tpu.memory_space<vmem>>, vector<128x128xbf16>
    %cst_7 = arith.constant dense<0.000000e+00> : vector<16x128xf32>
    %12 = tpu.matmul %10, %11, %cst_7 {dimension_numbers = #tpu.dot_dimension_numbers<[1], [0], [0], [1], [0, 0, 1, 1], [], []>} : vector<16x128xbf16>, vector<128x128xbf16>, vector<16x128xf32> -> vector<16x128xf32>
    %c0_8 = arith.constant 0 : index
    %c0_9 = arith.constant 0 : index
    %13 = vector.load %arg5[%c0_8, %c0_9] : memref<1x128xf32, #tpu.memory_space<vmem>>, vector<1x128xf32>
    %14 = vector.broadcast %13 : vector<1x128xf32> to vector<16x128xf32>
    %15 = arith.addf %12, %14 : vector<16x128xf32>
    %16 = arith.truncf %15 : vector<16x128xf32> to vector<16x128xbf16>
    %c0_10 = arith.constant 0 : index
    %c0_11 = arith.constant 0 : index
    %17 = vector.load %arg6[%c0_10, %c0_11] : memref<16x128xbf16, #tpu.memory_space<vmem>>, vector<16x128xbf16>
    tpu.vector_store %arg6[%c0_10, %c0_11], %16 {strides = array<i32>} : memref<16x128xbf16, #tpu.memory_space<vmem>>, vector<16x128xbf16>,
    %18 = arith.extf %16 : vector<16x128xbf16> to vector<16x128xf32>
    %cst_12 = arith.constant dense<0.000000e+00> : vector<128xf32>
    %19 = vector.multi_reduction <add>, %18, %cst_12 [0] : vector<16x128xf32> to vector<128xf32>
    %20 = vector.shape_cast %19 : vector<128xf32> to vector<1x128xf32>
    %21 = arith.mulf %18, %18 : vector<16x128xf32>
    %cst_13 = arith.constant dense<0.000000e+00> : vector<128xf32>
    %22 = vector.multi_reduction <add>, %21, %cst_13 [0] : vector<16x128xf32> to vector<128xf32>
    %23 = vector.shape_cast %22 : vector<128xf32> to vector<1x128xf32>
    %24 = tpu.concatenate %20, %23 in 0 : vector<1x128xf32>, vector<1x128xf32> -> vector<2x128xf32>
    %25 = vector.shape_cast %24 : vector<2x128xf32> to vector<1x2x128xf32>
    %c0_14 = arith.constant 0 : index
    %c0_15 = arith.constant 0 : index
    %c0_16 = arith.constant 0 : index
    %26 = vector.load %arg7[%c0_14, %c0_15, %c0_16] : memref<1x2x128xf32, #tpu.memory_space<vmem>>, vector<1x2x128xf32>
    tpu.vector_store %arg7[%c0_14, %c0_15, %c0_16], %25 {strides = array<i32>} : memref<1x2x128xf32, #tpu.memory_space<vmem>>, vector<1x2x128xf32>,
    return
  }
  func.func @transform_0(%arg0: i32) -> (i32, i32) {
    %c0_i32 = arith.constant 0 : i32
    %c0_i32_0 = arith.constant 0 : i32
    return %arg0, %c0_i32 : i32, i32
  }
  func.func @transform_1(%arg0: i32) -> (i32, i32) {
    %c0_i32 = arith.constant 0 : i32
    %c0_i32_0 = arith.constant 0 : i32
    %c0_i32_1 = arith.constant 0 : i32
    return %c0_i32, %c0_i32_0 : i32, i32
  }
  func.func @transform_2(%arg0: i32) -> (i32, i32) {
    %c0_i32 = arith.constant 0 : i32
    %c0_i32_0 = arith.constant 0 : i32
    %c0_i32_1 = arith.constant 0 : i32
    return %c0_i32, %c0_i32_0 : i32, i32
  }
  func.func @transform_3(%arg0: i32) -> (i32, i32) {
    %c0_i32 = arith.constant 0 : i32
    %c0_i32_0 = arith.constant 0 : i32
    %c0_i32_1 = arith.constant 0 : i32
    return %c0_i32, %c0_i32_0 : i32, i32
  }
  func.func @transform_4(%arg0: i32) -> (i32, i32) {
    %c0_i32 = arith.constant 0 : i32
    %c0_i32_0 = arith.constant 0 : i32
    %c0_i32_1 = arith.constant 0 : i32
    return %c0_i32, %c0_i32_0 : i32, i32
  }
  func.func @transform_5(%arg0: i32) -> (i32, i32) {
    %c0_i32 = arith.constant 0 : i32
    %c0_i32_0 = arith.constant 0 : i32
    return %arg0, %c0_i32 : i32, i32
  }
  func.func @transform_6(%arg0: i32) -> (i32, i32, i32) {
    %c0_i32 = arith.constant 0 : i32
    %c0_i32_0 = arith.constant 0 : i32
    %c0_i32_1 = arith.constant 0 : i32
    return %arg0, %c0_i32, %c0_i32_0 : i32, i32, i32
  }
}

module attributes {stable_mosaic.version = 11 : i64} {
  func.func @_bn_relu_pool_kernel(%arg0: i32, %arg1: memref<16x128xbf16, #tpu.memory_space<vmem>>, %arg2: memref<1x128xf32, #tpu.memory_space<vmem>>, %arg3: memref<1x128xf32, #tpu.memory_space<vmem>>, %arg4: memref<16x8xf32, #tpu.memory_space<vmem>>, %arg5: memref<16x128xbf16, #tpu.memory_space<vmem>>, %arg6: memref<1x8x128xf32, #tpu.memory_space<vmem>>) attributes {dimension_semantics = [#tpu.dimension_semantics<parallel>], iteration_bounds = array<i64: 1>, scalar_prefetch = 0 : i64, scratch_operands = 0 : i64, tpu.core_type = #tpu.core_type<tc>, window_params = [{transform_indices = @transform_0, window_bounds = array<i64: 16, 128>}, {pipeline_mode = #tpu.pipeline_mode<synchronous>, transform_indices = @transform_1, window_bounds = array<i64: 1, 128>}, {pipeline_mode = #tpu.pipeline_mode<synchronous>, transform_indices = @transform_2, window_bounds = array<i64: 1, 128>}, {transform_indices = @transform_3, window_bounds = array<i64: 16, 8>}, {transform_indices = @transform_4, window_bounds = array<i64: 16, 128>}, {transform_indices = @transform_5, window_bounds = array<i64: 1, 8, 128>}]} {
    %c0 = arith.constant 0 : index
    %c0_0 = arith.constant 0 : index
    %0 = vector.load %arg1[%c0, %c0_0] : memref<16x128xbf16, #tpu.memory_space<vmem>>, vector<16x128xbf16>
    %1 = arith.extf %0 : vector<16x128xbf16> to vector<16x128xf32>
    %c0_1 = arith.constant 0 : index
    %c0_2 = arith.constant 0 : index
    %2 = vector.load %arg2[%c0_1, %c0_2] : memref<1x128xf32, #tpu.memory_space<vmem>>, vector<1x128xf32>
    %3 = vector.broadcast %2 : vector<1x128xf32> to vector<16x128xf32>
    %4 = arith.mulf %1, %3 : vector<16x128xf32>
    %c0_3 = arith.constant 0 : index
    %c0_4 = arith.constant 0 : index
    %5 = vector.load %arg3[%c0_3, %c0_4] : memref<1x128xf32, #tpu.memory_space<vmem>>, vector<1x128xf32>
    %6 = vector.broadcast %5 : vector<1x128xf32> to vector<16x128xf32>
    %7 = arith.addf %4, %6 : vector<16x128xf32>
    %cst = arith.constant 0.000000e+00 : f32
    %8 = vector.broadcast %cst : f32 to vector<16x128xf32>
    %9 = arith.maximumf %7, %8 : vector<16x128xf32>
    %10 = arith.truncf %9 : vector<16x128xf32> to vector<16x128xbf16>
    %c0_5 = arith.constant 0 : index
    %c0_6 = arith.constant 0 : index
    %11 = vector.load %arg5[%c0_5, %c0_6] : memref<16x128xbf16, #tpu.memory_space<vmem>>, vector<16x128xbf16>
    tpu.vector_store %arg5[%c0_5, %c0_6], %10 {strides = array<i32>} : memref<16x128xbf16, #tpu.memory_space<vmem>>, vector<16x128xbf16>,
    %c0_7 = arith.constant 0 : index
    %c0_8 = arith.constant 0 : index
    %12 = vector.load %arg4[%c0_7, %c0_8] : memref<16x8xf32, #tpu.memory_space<vmem>>, vector<16x8xf32>
    %cst_9 = arith.constant dense<0.000000e+00> : vector<8x128xf32>
    %13 = tpu.matmul %12, %9, %cst_9 {dimension_numbers = #tpu.dot_dimension_numbers<[0], [0], [1], [1], [0, 1, 1, 1], [], []>} : vector<16x8xf32>, vector<16x128xf32>, vector<8x128xf32> -> vector<8x128xf32>
    %14 = vector.shape_cast %13 : vector<8x128xf32> to vector<1x8x128xf32>
    %c0_10 = arith.constant 0 : index
    %c0_11 = arith.constant 0 : index
    %c0_12 = arith.constant 0 : index
    %15 = vector.load %arg6[%c0_10, %c0_11, %c0_12] : memref<1x8x128xf32, #tpu.memory_space<vmem>>, vector<1x8x128xf32>
    tpu.vector_store %arg6[%c0_10, %c0_11, %c0_12], %14 {strides = array<i32>} : memref<1x8x128xf32, #tpu.memory_space<vmem>>, vector<1x8x128xf32>,
    return
  }
  func.func @transform_0(%arg0: i32) -> (i32, i32) {
    %c0_i32 = arith.constant 0 : i32
    %c0_i32_0 = arith.constant 0 : i32
    return %arg0, %c0_i32 : i32, i32
  }
  func.func @transform_1(%arg0: i32) -> (i32, i32) {
    %c0_i32 = arith.constant 0 : i32
    %c0_i32_0 = arith.constant 0 : i32
    %c0_i32_1 = arith.constant 0 : i32
    return %c0_i32, %c0_i32_0 : i32, i32
  }
  func.func @transform_2(%arg0: i32) -> (i32, i32) {
    %c0_i32 = arith.constant 0 : i32
    %c0_i32_0 = arith.constant 0 : i32
    %c0_i32_1 = arith.constant 0 : i32
    return %c0_i32, %c0_i32_0 : i32, i32
  }
  func.func @transform_3(%arg0: i32) -> (i32, i32) {
    %c0_i32 = arith.constant 0 : i32
    %c0_i32_0 = arith.constant 0 : i32
    return %arg0, %c0_i32 : i32, i32
  }
  func.func @transform_4(%arg0: i32) -> (i32, i32) {
    %c0_i32 = arith.constant 0 : i32
    %c0_i32_0 = arith.constant 0 : i32
    return %arg0, %c0_i32 : i32, i32
  }
  func.func @transform_5(%arg0: i32) -> (i32, i32, i32) {
    %c0_i32 = arith.constant 0 : i32
    %c0_i32_0 = arith.constant 0 : i32
    %c0_i32_1 = arith.constant 0 : i32
    return %arg0, %c0_i32, %c0_i32_0 : i32, i32, i32
  }
}

module attributes {stable_mosaic.version = 11 : i64} {
  func.func @_rows_matmul_kernel(%arg0: i32, %arg1: memref<16x128xbf16, #tpu.memory_space<vmem>>, %arg2: memref<128x128xbf16, #tpu.memory_space<vmem>>, %arg3: memref<16x128xbf16, #tpu.memory_space<vmem>>) attributes {dimension_semantics = [#tpu.dimension_semantics<parallel>], iteration_bounds = array<i64: 1>, scalar_prefetch = 0 : i64, scratch_operands = 0 : i64, tpu.core_type = #tpu.core_type<tc>, window_params = [{transform_indices = @transform_0, window_bounds = array<i64: 16, 128>}, {pipeline_mode = #tpu.pipeline_mode<synchronous>, transform_indices = @transform_1, window_bounds = array<i64: 128, 128>}, {transform_indices = @transform_2, window_bounds = array<i64: 16, 128>}]} {
    %c0 = arith.constant 0 : index
    %c0_0 = arith.constant 0 : index
    %0 = vector.load %arg1[%c0, %c0_0] : memref<16x128xbf16, #tpu.memory_space<vmem>>, vector<16x128xbf16>
    %c0_1 = arith.constant 0 : index
    %c0_2 = arith.constant 0 : index
    %1 = vector.load %arg2[%c0_1, %c0_2] : memref<128x128xbf16, #tpu.memory_space<vmem>>, vector<128x128xbf16>
    %cst = arith.constant dense<0.000000e+00> : vector<16x128xf32>
    %2 = tpu.matmul %0, %1, %cst {dimension_numbers = #tpu.dot_dimension_numbers<[1], [0], [0], [1], [0, 0, 1, 1], [], []>} : vector<16x128xbf16>, vector<128x128xbf16>, vector<16x128xf32> -> vector<16x128xf32>
    %3 = arith.truncf %2 : vector<16x128xf32> to vector<16x128xbf16>
    %c0_3 = arith.constant 0 : index
    %c0_4 = arith.constant 0 : index
    %4 = vector.load %arg3[%c0_3, %c0_4] : memref<16x128xbf16, #tpu.memory_space<vmem>>, vector<16x128xbf16>
    tpu.vector_store %arg3[%c0_3, %c0_4], %3 {strides = array<i32>} : memref<16x128xbf16, #tpu.memory_space<vmem>>, vector<16x128xbf16>,
    return
  }
  func.func @transform_0(%arg0: i32) -> (i32, i32) {
    %c0_i32 = arith.constant 0 : i32
    %c0_i32_0 = arith.constant 0 : i32
    return %arg0, %c0_i32 : i32, i32
  }
  func.func @transform_1(%arg0: i32) -> (i32, i32) {
    %c0_i32 = arith.constant 0 : i32
    %c0_i32_0 = arith.constant 0 : i32
    %c0_i32_1 = arith.constant 0 : i32
    return %c0_i32, %c0_i32_0 : i32, i32
  }
  func.func @transform_2(%arg0: i32) -> (i32, i32) {
    %c0_i32 = arith.constant 0 : i32
    %c0_i32_0 = arith.constant 0 : i32
    return %arg0, %c0_i32 : i32, i32
  }
}

</mosaic_0001>

<bundles_post_ra>
// kernel: gin_cnn_forward.11
= control target key start
LH: loop header
LB: loop body
LE: loop exit
PB: predicated region body
PF: predicated region fallthrough
CT: control target
= control target key end

     0   :  { %v144_v1 = vmov 0.0|0.0   ;;  %vm145_vm0 = vmmov 0   ;;  %v146_v3 = vmov 0.0   ;;  %vm47_vm1 = vcmask 130048   ;;  %s177_s0 = inlined_call_operand.vmem [shape: f32[16,8], index: 0, kind: input, shape index: {}]   ;;  %s178_s1 = inlined_call_operand.vmem [shape: f32[16,8], index: 1, kind: input, shape index: {}]   ;;  %s179_s2 = inlined_call_operand.vmem [shape: f32[1,8,8], index: 2, kind: output, shape index: {}]  }
   0x1   :  { %v11_v0 = vld [vmem:[%s177_s0] sm:$0xff]  ;;  %138 = vmatprep.subr.bf16.mxu0 %v144_v1  ;;  %135 = vmatprep.mubr.msk.f32.mxu0 %vm145_vm0, %v146_v3  ;;  %v14_v4 = vld [vmem:[%s178_s1 + $0x8] sm:$0xff]  ;;  %vm121_vm2 = vcmask 64512  }
   0x2   :  { %v13_v2 = vld [vmem:[%s178_s1] sm:$0xff]  ;;  %15 = vxpose.xlu0.b32.start [1/2] (short) (narrow) %v11_v0, 8  ;;  %v12_v5 = vld [vmem:[%s177_s0 + $0x8] sm:$0xff] }
   0x3   :  { %v139_v6 = vpack.c.bf16 %v14_v4, %v13_v2 }
   0x5   :  { %140 = vmatpush3.bf16.msra.mxu0 %v139_v6 }
   0x6   :  { %16 = vxpose.xlu0.b32.end [2/2] (short) (narrow) %v12_v5, 8 }
  0x82   :  { %v31_v7 = vpop.trf.xlu0 }
  0x83   :  { %136 = vmatmul.mubr.msk.f32.vlgmr.msra.gmra.mrb[0].mxu0 %vm47_vm1, %v31_v7 }
 0x156   :  { %v117_v8 = vpop.f32.mrb[0].mxu0 }
 0x157   :  { %122 = vst.msk [vmem:[%s179_s2] sm:$0xff] %vm121_vm2, %v117_v8  ;;  %v137_v9 = vpop.f32.mrb[1].mxu0 }

// kernel: gin_cnn_forward.10
= control target key start
LH: loop header
LB: loop body
LE: loop exit
PB: predicated region body
PF: predicated region fallthrough
CT: control target
= control target key end

     0   :  { %7 = vsyncpa [#allocation3], 0  ;;  %s195_s0 = inlined_call_operand.vmem [shape: f32[1,6], index: 0, kind: input, shape index: {}]   ;;  %s196_s1 = inlined_call_operand.vmem [shape: f32[6,16,16], index: 1, kind: input, shape index: {}]   ;;  %s197_s2 = inlined_call_operand.vmem [shape: bf16[16,16], index: 2, kind: output, shape index: {}]  }
   0x1   :  { %s14_s11 = sshll.u32 %s195_s0, 4  ;;  %s15_s11 = int_to_ptr.vmem [resolvable:$true] %s14_s11 }
   0x2   :  { %s111_s12 = scalar_lea.vmem %s15_s11, 16  ;;  %p116_p1 = scmp.lt.s32.totalorder %s15_s11, %s15_s11 }
   0x3   :  { %p112_p0 = scmp.ne.s32.totalorder %s15_s11, %s111_s12  ;;  %p117_p2 = scmp.lt.s32.totalorder %s111_s12, %s111_s12 }
   0x5   :  { %p118_p3 = por %p117_p2, %p116_p1 }
   0x7   :  { %p119_p4 = pnand %p118_p3, %p112_p0 }
   0x9   :  { %122 = shalt.err (!%p119_p4)
}
   0xa   :  { %s125_s13 = smov [#allocation2]  }
   0xb   :  { %17 = dma.vmem_to_smem %s15_s11, 16, %s125_s13, [#allocation3]  }
   0xc   :  { %123 = dma.done.wait [#allocation3], 16  }
   0xd   :  { %124 = vsyncadd [#allocation3], 4294967280 }
   0xe   :  { %23 = sfence }
   0xf   :  { %s24_s14 = sld [smem:[#allocation2]]  ;;  %s91_s15 = sld [smem:[#allocation2 + $0x1]]  ;;  %v25_v0 = vld [vmem:[%s196_s1] sm:$0xff]  ;;  %v92_v1 = vld [vmem:[%s196_s1 + $0x10] sm:$0xff]  ;;  %v26_v6 = vld [vmem:[%s196_s1 + $0x8] sm:$0xff]  ;;  %vm83_vm0 = vcmask 125952  }
  0x10   :  { %s94_s16 = sld [smem:[#allocation2 + $0x2]]  ;;  %s144_s17 = sld [smem:[#allocation2 + $0x3]]  ;;  %v95_v2 = vld [vmem:[%s196_s1 + $0x20] sm:$0xff]  ;;  %v98_v5 = vld [vmem:[%s196_s1 + $0x30] sm:$0xff]  ;;  %v93_v11 = vld [vmem:[%s196_s1 + $0x18] sm:$0xff] }
  0x11   :  { %s146_s0 = sld [smem:[#allocation2 + $0x4]]  ;;  %s148_s18 = sld [smem:[#allocation2 + $0x5]]  ;;  %v96_v12 = vld [vmem:[%s196_s1 + $0x28] sm:$0xff]  ;;  %v101_v14 = vld [vmem:[%s196_s1 + $0x40] sm:$0xff]  ;;  %v99_v19 = vld [vmem:[%s196_s1 + $0x38] sm:$0xff] }
  0x12   :  { %v104_v20 = vld [vmem:[%s196_s1 + $0x50] sm:$0xff]  ;;  %v102_v26 = vld [vmem:[%s196_s1 + $0x48] sm:$0xff]  ;;  %v105_v31 = vld [vmem:[%s196_s1 + $0x58] sm:$0xff] }
  0x15   :  { %v27_v3 = vstv %s24_s14  ;;  %v34_v4 = vstv %s91_s15 }
  0x16   :  { %v28_v7 = vmul.f32 %v27_v3, %v25_v0  ;;  %v35_v8 = vmul.f32 %v92_v1, %v34_v4  ;;  %v43_v9 = vstv %s94_s16  ;;  %v52_v10 = vstv %s144_s17 }
  0x17   :  { %v44_v13 = vmul.f32 %v95_v2, %v43_v9  ;;  %v61_v15 = vstv %s146_s0  ;;  %v53_v17 = vmul.f32 %v98_v5, %v52_v10  ;;  %v29_v18 = vmul.f32 %v27_v3, %v26_v6 }
  0x18   :  { %v37_v16 = vadd.f32 %v35_v8, %v28_v7  ;;  %v70_v21 = vstv %s148_s18  ;;  %v36_v22 = vmul.f32 %v93_v11, %v34_v4  ;;  %v45_v23 = vmul.f32 %v96_v12, %v43_v9 }
  0x19   :  { %v62_v25 = vmul.f32 %v101_v14, %v61_v15  ;;  %v54_v28 = vmul.f32 %v99_v19, %v52_v10  ;;  %v71_v30 = vmul.f32 %v104_v20, %v70_v21  ;;  %v63_v33 = vmul.f32 %v102_v26, %v61_v15 }
  0x1a   :  { %v46_v24 = vadd.f32 %v44_v13, %v37_v16  ;;  %v38_v27 = vadd.f32 %v36_v22, %v29_v18  ;;  %v72_v36 = vmul.f32 %v105_v31, %v70_v21 }
  0x1c   :  { %v55_v29 = vadd.f32 %v53_v17, %v46_v24  ;;  %v47_v32 = vadd.f32 %v45_v23, %v38_v27 }
  0x1e   :  { %v64_v34 = vadd.f32 %v62_v25, %v55_v29  ;;  %v56_v35 = vadd.f32 %v54_v28, %v47_v32 }
  0x20   :  { %v73_v37 = vadd.f32 %v71_v30, %v64_v34  ;;  %v65_v38 = vadd.f32 %v63_v33, %v56_v35 }
  0x22   :  { %v108_v39 = vpack.c.bf16 %v73_v37, %v73_v37  ;;  %v74_v40 = vadd.f32 %v72_v36, %v65_v38 }
  0x24   :  { %84 = vst.msk [vmem:[%s197_s2] sm:$0xf] %vm83_vm0, %v108_v39  ;;  %v109_v41 = vpack.c.bf16 %v74_v40, %v74_v40 }
  0x26   :  { %85 = vst.msk [vmem:[%s197_s2 + $0x4] sm:$0xf] %vm83_vm0, %v109_v41 }
  0x27   :  { %90 = vsyncpa [#allocation3], 1 }

// kernel: gin_cnn_forward.12
= control target key start
LH: loop header
LB: loop body
LE: loop exit
PB: predicated region body
PF: predicated region fallthrough
CT: control target
= control target key end

     0   :  { %vm24_vm0 = vcmask 1043456   ;;  %v105_v0 = vmov 0.0   ;;  %vm106_vm1 = vmmov 0   ;;  %vm20_vm2 = vcmask 64512   ;;  %s131_s1 = inlined_call_operand.vmem [shape: bf16[8,128], index: 1, kind: input, shape index: {}]   ;;  %s132_s0 = inlined_call_operand.vmem [shape: bf16[16,8], index: 0, kind: input, shape index: {}]   ;;  %s133_s2 = inlined_call_operand.vmem [shape: bf16[16,128], index: 2, kind: output, shape index: {}]  }
   0x1   :  { %96 = vmatprep.subr.bf16.mxu0 %v105_v0  ;;  %v14_v1 = vld [vmem:[%s131_s1] sm:$0xf]  ;;  %98 = vmatprep.mubr.msk.bf16.mxu0 %vm106_vm1, %v105_v0 }
   0x2   :  { %v26_v2 = vsel %vm24_vm0, %v14_v1, 0  ;;  %v104_v3 = vld [vmem:[%s132_s0] sm:$0xff]  }
   0x3   :  { %97 = vmatpush3.bf16.msra.mxu0 %v26_v2 }
   0x6   :  { %99 = vmatmul.mubr.msk.bf16.vlgmr.msra.gmra.mrb[0].mxu0 %vm20_vm2, %v104_v3 }
  0xd9   :  { %v62_v4 = vpop.f32.mrb[0].mxu0 }
  0xda   :  { %v100_v5 = vpop.f32.mrb[1].mxu0 }
  0xdb   :  { %v65_v6 = vpop.f32.mrb[2].mxu0 }
  0xdc   :  { %v92_v7 = vpack.c.bf16 %v65_v6, %v62_v4  ;;  %v101_v8 = vpop.f32.mrb[3].mxu0 }
  0xde   :  { %93 = vst [vmem:[%s133_s2] sm:$0xff] %v92_v7  }

// kernel: gin_cnn_forward.13
= control target key start
LH: loop header
LB: loop body
LE: loop exit
PB: predicated region body
PF: predicated region fallthrough
CT: control target
= control target key end

     0   :  { %v173_v0 = vmov 0.0   ;;  %vm174_vm0 = vmmov 0   ;;  %vm49_vm1 = vcmask 130048   ;;  %vm131_vm2 = vcmask 1040384   ;;  %s226_s3 = inlined_call_operand.vmem [shape: bf16[16,128], index: 3, kind: input, shape index: {}]   ;;  %s227_s2 = inlined_call_operand.vmem [shape: bf16[16,16], index: 2, kind: input, shape index: {}]   ;;  %s228_s0 = inlined_call_operand.<no memory space> [shape: f32[1,1], index: 0, kind: input, shape index: {}]   ;;  %s229_s1 = inlined_call_operand.vmem [shape: f32[1,128], index: 1, kind: input, shape index: {}]   ;;  %s230_s4 = inlined_call_operand.vmem [shape: bf16[16,128], index: 4, kind: output, shape index: {0}]   ;;  %s231_s5 = inlined_call_operand.vmem [shape: f32[1,2,128], index: 5, kind: output, shape index: {1}]  }
   0x1   :  { %163 = vmatprep.subr.bf16.mxu0 %v173_v0  ;;  %v171_v1 = vld [vmem:[%s226_s3] sm:$0xff]   ;;  %165 = vmatprep.mubr.msk.bf16.mxu0 %vm174_vm0, %v173_v0  ;;  %v35_v5 = vstv %s228_s0 }
   0x2   :  { %v172_v2 = vld [vmem:[%s227_s2] sm:$0xff]   ;;  %164 = vmatpush3.bf16.msra.mxu0 %v171_v1 }
   0x3   :  { %v153_v3 = vld [vmem:[%s226_s3] sm:$0xff]  }
   0x4   :  { %v154_v4 = vunpack.c.l.bf16 %v153_v3  ;;  %v155_v6 = vunpack.c.h.bf16 %v153_v3  ;;  %v147_v12 = vld [vmem:[%s229_s1] ss:$0 sm:$0xff] }
   0x5   :  { %166 = vmatmul.mubr.msk.bf16.vlgmr.msra.gmra.mrb[0].mxu0 %vm49_vm1, %v172_v2 }
   0x6   :  { %v36_v7 = vmul.f32 %v154_v4, %v35_v5  ;;  %v37_v8 = vmul.f32 %v155_v6, %v35_v5 }
  0xd8   :  { %v87_v9 = vpop.f32.mrb[0].mxu0 }
  0xd9   :  { %v88_v10 = vadd.f32 %v87_v9, %v36_v7  ;;  %v167_v11 = vpop.f32.mrb[1].mxu0 }
  0xda   :  { %v90_v13 = vpop.f32.mrb[2].mxu0 }
  0xdb   :  { %v91_v14 = vadd.f32 %v90_v13, %v37_v8  ;;  %v168_v15 = vpop.f32.mrb[3].mxu0  ;;  %v101_v16 = vadd.f32 %v147_v12, %v88_v10 }
  0xdd   :  { %v102_v17 = vadd.f32 %v147_v12, %v91_v14 }
  0xdf   :  { %v103_v18 = vpack.c.bf16 %v102_v17, %v101_v16 }
  0xe1   :  { %160 = vst [vmem:[%s230_s4] sm:$0xff] %v103_v18   ;;  %v113_v19 = vunpack.c.l.bf16 %v103_v18  ;;  %v114_v20 = vunpack.c.h.bf16 %v103_v18 }
  0xe3   :  { %v115_v21 = vadd.f32 %v114_v20, %v113_v19  ;;  %v122_v22 = vmul.f32 %v113_v19, %v113_v19  ;;  %v123_v23 = vmul.f32 %v114_v20, %v114_v20 }
  0xe5   :  { %v116_v24 = vrot.slane %v115_v21, 4  ;;  %v124_v25 = vadd.f32 %v123_v23, %v122_v22 }
  0xe7   :  { %v117_v26 = vadd.f32 %v116_v24, %v115_v21  ;;  %v125_v27 = vrot.slane %v124_v25, 4 }
  0xe9   :  { %v118_v28 = vrot.slane %v117_v26, 2  ;;  %v126_v29 = vadd.f32 %v125_v27, %v124_v25 }
  0xeb   :  { %v119_v30 = vadd.f32 %v118_v28, %v117_v26  ;;  %v127_v31 = vrot.slane %v126_v29, 2 }
  0xed   :  { %v120_v32 = vrot.slane %v119_v30, 1  ;;  %v128_v33 = vadd.f32 %v127_v31, %v126_v29 }
  0xef   :  { %v129_v34 = vrot.slane %v128_v33, 1  ;;  %v121_v35 = vadd.f32 %v120_v32, %v119_v30 }
  0xf1   :  { %v130_v36 = vadd.f32 %v129_v34, %v128_v33 }
  0xf3   :  { %v132_v37 = vsel %vm131_vm2, %v121_v35, %v130_v36 }
  0xf4   :  { %133 = vst [vmem:[%s231_s5] sm:$0x3] %v132_v37 }

// kernel: gin_cnn_forward.15
= control target key start
LH: loop header
LB: loop body
LE: loop exit
PB: predicated region body
PF: predicated region fallthrough
CT: control target
= control target key end

     0   :  { %v202_v1 = vmov 0.0|0.0   ;;  %vm203_vm0 = vmmov 0   ;;  %v204_v3 = vmov 0.0   ;;  %vm87_vm1 = vcmask 130048   ;;  %s256_s3 = inlined_call_operand.vmem [shape: f32[16,8], index: 3, kind: input, shape index: {}]   ;;  %s257_s0 = inlined_call_operand.vmem [shape: bf16[16,128], index: 0, kind: input, shape index: {}]   ;;  %s258_s1 = inlined_call_operand.vmem [shape: f32[1,128], index: 1, kind: input, shape index: {}]   ;;  %s259_s2 = inlined_call_operand.vmem [shape: f32[1,128], index: 2, kind: input, shape index: {}]   ;;  %s260_s4 = inlined_call_operand.vmem [shape: bf16[16,128], index: 4, kind: output, shape index: {0}]   ;;  %s261_s5 = inlined_call_operand.vmem [shape: f32[1,8,128], index: 5, kind: output, shape index: {1}]  }
   0x1   :  { %v53_v0 = vld [vmem:[%s256_s3] sm:$0xff]  ;;  %196 = vmatprep.subr.bf16.mxu0 %v202_v1  ;;  %193 = vmatprep.mubr.msk.f32.mxu0 %vm203_vm0, %v204_v3  ;;  %v54_v7 = vld [vmem:[%s256_s3 + $0x8] sm:$0xff] }
   0x2   :  { %v178_v2 = vld [vmem:[%s257_s0] sm:$0xff]   ;;  %55 = vxpose.xlu0.b32.start [1/2] (short) (narrow) %v53_v0, 8 }
   0x3   :  { %v179_v4 = vunpack.c.l.bf16 %v178_v2  ;;  %v180_v5 = vunpack.c.h.bf16 %v178_v2  ;;  %v170_v6 = vld [vmem:[%s258_s1] ss:$0 sm:$0xff] }
   0x4   :  { %v171_v8 = vld [vmem:[%s259_s2] ss:$0 sm:$0xff] }
   0x5   :  { %v30_v9 = vmul.f32 %v179_v4, %v170_v6  ;;  %v31_v10 = vmul.f32 %v180_v5, %v170_v6 }
   0x6   :  { %56 = vxpose.xlu0.b32.end [2/2] (short) (narrow) %v54_v7, 8 }
   0x7   :  { %v39_v11 = vadd.f32 %v171_v8, %v30_v9  ;;  %v40_v12 = vadd.f32 %v171_v8, %v31_v10 }
   0x9   :  { %v41_v13 = vmax.f32 %v39_v11, 0.0  ;;  %v42_v14 = vmax.f32 %v40_v12, 0.0 }
   0xb   :  { %v184_v15 = vpack.c.bf16 %v42_v14, %v41_v13 }
   0xd   :  { %185 = vst [vmem:[%s260_s4] sm:$0xff] %v184_v15   ;;  %198 = vmatpush3.bf16.msra.mxu0 %v184_v15 }
  0x82   :  { %v71_v16 = vpop.trf.xlu0 }
  0x83   :  { %194 = vmatmul.mubr.msk.f32.vlgmr.msra.gmra.mrb[0].mxu0 %vm87_vm1, %v71_v16 }
 0x156   :  { %v157_v17 = vpop.f32.mrb[0].mxu0 }
 0x157   :  { %161 = vst [vmem:[%s261_s5] sm:$0xff] %v157_v17  ;;  %v195_v18 = vpop.f32.mrb[1].mxu0 }

// kernel: gin_cnn_forward.14
= control target key start
LH: loop header
LB: loop body
LE: loop exit
PB: predicated region body
PF: predicated region fallthrough
CT: control target
= control target key end

     0   :  { %v262_v0 = vmov 0.0   ;;  %vm263_vm0 = vmmov 0   ;;  %vm188_vm1 = vcmask 1040384   ;;  %s341_s3 = inlined_call_operand.vmem [shape: bf16[128,128], index: 3, kind: input, shape index: {}]   ;;  %s342_s0 = inlined_call_operand.vmem [shape: bf16[16,128], index: 0, kind: input, shape index: {}]   ;;  %s343_s1 = inlined_call_operand.vmem [shape: f32[1,128], index: 1, kind: input, shape index: {}]   ;;  %s344_s2 = inlined_call_operand.vmem [shape: f32[1,128], index: 2, kind: input, shape index: {}]   ;;  %s345_s4 = inlined_call_operand.vmem [shape: f32[1,128], index: 4, kind: input, shape index: {}]   ;;  %s346_s5 = inlined_call_operand.vmem [shape: bf16[16,128], index: 5, kind: output, shape index: {0}]   ;;  %s347_s6 = inlined_call_operand.vmem [shape: f32[1,2,128], index: 6, kind: output, shape index: {1}]  }
   0x1   :  { %232 = vmatprep.subr.bf16.mxu0 %v262_v0  ;;  %v254_v1 = vld [vmem:[%s341_s3] sm:$0xff]   ;;  %248 = vmatprep.mubr.msk.bf16.mxu0 %vm263_vm0, %v262_v0  ;;  %v255_v2 = vld [vmem:[%s341_s3 + $0x8] sm:$0xff]   ;;  %v256_v3 = vld [vmem:[%s341_s3 + $0x10] sm:$0xff]  }
   0x2   :  { %233 = vmatpush3.bf16.msra.mxu0 %v254_v1  ;;  %v257_v4 = vld [vmem:[%s341_s3 + $0x18] sm:$0xff]   ;;  %v215_v5 = vld [vmem:[%s342_s0] sm:$0xff]   ;;  %v259_v12 = vld [vmem:[%s341_s3 + $0x28] sm:$0xff]  }
   0x3   :  { %234 = vmatprep.subr.bf16.mxu0 %v262_v0  ;;  %v216_v6 = vunpack.c.l.bf16 %v215_v5  ;;  %v217_v7 = vunpack.c.h.bf16 %v215_v5  ;;  %v258_v8 = vld [vmem:[%s341_s3 + $0x20] sm:$0xff]   ;;  %v260_v16 = vld [vmem:[%s341_s3 + $0x30] sm:$0xff]   ;;  %v261_v19 = vld [vmem:[%s341_s3 + $0x38] sm:$0xff]  }
   0x4   :  { %v199_v9 = vld [vmem:[%s343_s1] ss:$0 sm:$0xff] }
   0x5   :  { %v34_v10 = vmul.f32 %v216_v6, %v199_v9  ;;  %v35_v11 = vmul.f32 %v217_v7, %v199_v9  ;;  %v200_v13 = vld [vmem:[%s344_s2] ss:$0 sm:$0xff] }
   0x6   :  { %235 = vmatpush3.bf16.msra.mxu0 %v255_v2  ;;  %v201_v21 = vld [vmem:[%s345_s4] ss:$0 sm:$0xff] }
   0x7   :  { %236 = vmatprep.subr.bf16.mxu0 %v262_v0  ;;  %v43_v14 = vadd.f32 %v200_v13, %v34_v10  ;;  %v44_v15 = vadd.f32 %v200_v13, %v35_v11 }
   0x9   :  { %v45_v17 = vmax.f32 %v43_v14, 0.0  ;;  %v46_v18 = vmax.f32 %v44_v15, 0.0 }
   0xa   :  { %237 = vmatpush3.bf16.msra.mxu0 %v256_v3 }
   0xb   :  { %238 = vmatprep.subr.bf16.mxu0 %v262_v0  ;;  %v47_v20 = vpack.c.bf16 %v46_v18, %v45_v17 }
   0xe   :  { %239 = vmatpush3.bf16.msra.mxu0 %v257_v4 }
   0xf   :  { %240 = vmatprep.subr.bf16.mxu0 %v262_v0 }
  0x12   :  { %241 = vmatpush3.bf16.msra.mxu0 %v258_v8 }
  0x13   :  { %242 = vmatprep.subr.bf16.mxu0 %v262_v0 }
  0x16   :  { %243 = vmatpush3.bf16.msra.mxu0 %v259_v12 }
  0x17   :  { %244 = vmatprep.subr.bf16.mxu0 %v262_v0 }
  0x1a   :  { %245 = vmatpush3.bf16.msra.mxu0 %v260_v16 }
  0x1b   :  { %246 = vmatprep.subr.bf16.mxu0 %v262_v0 }
  0x1e   :  { %247 = vmatpush3.bf16.msra.mxu0 %v261_v19 }
  0x21   :  { %249 = vmatmul.mubr.bf16.vlgmr.msra.gmra.mrb[0].mxu0 %v47_v20 }
  0xf4   :  { %v153_v22 = vpop.f32.mrb[0].mxu0 }
  0xf5   :  { %v250_v23 = vpop.f32.mrb[1].mxu0  ;;  %v154_v25 = vadd.f32 %v201_v21, %v153_v22 }
  0xf6   :  { %v156_v24 = vpop.f32.mrb[2].mxu0 }
  0xf7   :  { %v157_v26 = vadd.f32 %v201_v21, %v156_v24  ;;  %v251_v27 = vpop.f32.mrb[3].mxu0 }
  0xf9   :  { %v160_v28 = vpack.c.bf16 %v157_v26, %v154_v25 }
  0xfb   :  { %222 = vst [vmem:[%s346_s5] sm:$0xff] %v160_v28   ;;  %v170_v29 = vunpack.c.l.bf16 %v160_v28  ;;  %v171_v30 = vunpack.c.h.bf16 %v160_v28 }
  0xfd   :  { %v172_v31 = vadd.f32 %v171_v30, %v170_v29  ;;  %v179_v32 = vmul.f32 %v170_v29, %v170_v29  ;;  %v180_v33 = vmul.f32 %v171_v30, %v171_v30 }
  0xff   :  { %v173_v34 = vrot.slane %v172_v31, 4  ;;  %v181_v35 = vadd.f32 %v180_v33, %v179_v32 }
 0x101   :  { %v174_v36 = vadd.f32 %v173_v34, %v172_v31  ;;  %v182_v37 = vrot.slane %v181_v35, 4 }
 0x103   :  { %v175_v38 = vrot.slane %v174_v36, 2  ;;  %v183_v39 = vadd.f32 %v182_v37, %v181_v35 }
 0x105   :  { %v176_v40 = vadd.f32 %v175_v38, %v174_v36  ;;  %v184_v41 = vrot.slane %v183_v39, 2 }
 0x107   :  { %v177_v42 = vrot.slane %v176_v40, 1  ;;  %v185_v43 = vadd.f32 %v184_v41, %v183_v39 }
 0x109   :  { %v186_v44 = vrot.slane %v185_v43, 1  ;;  %v178_v45 = vadd.f32 %v177_v42, %v176_v40 }
 0x10b   :  { %v187_v46 = vadd.f32 %v186_v44, %v185_v43 }
 0x10d   :  { %v189_v47 = vsel %vm188_vm1, %v178_v45, %v187_v46 }
 0x10e   :  { %190 = vst [vmem:[%s347_s6] sm:$0x3] %v189_v47 }

// kernel: gin_cnn_forward.19
= control target key start
LH: loop header
LB: loop body
LE: loop exit
PB: predicated region body
PF: predicated region fallthrough
CT: control target
= control target key end

     0   :  { %v242_v2 = vmov 0.0|0.0   ;;  %vm243_vm0 = vmmov 0   ;;  %v244_v8 = vmov 0.0   ;;  %s308_s0 = inlined_call_operand.vmem [shape: bf16[16,128], index: 0, kind: input, shape index: {}]   ;;  %s309_s1 = inlined_call_operand.vmem [shape: f32[1,128], index: 1, kind: input, shape index: {}]   ;;  %s310_s2 = inlined_call_operand.vmem [shape: f32[1,128], index: 2, kind: input, shape index: {}]   ;;  %s311_s3 = inlined_call_operand.vmem [shape: f32[16,8], index: 3, kind: input, shape index: {}]   ;;  %s312_s4 = inlined_call_operand.hbm [shape: bf16[16,128], index: 4, kind: output, shape index: {0}]   ;;  %s313_s5 = inlined_call_operand.vmem [shape: f32[1,8,128], index: 5, kind: output, shape index: {1}]  }
   0x1   :  { %v54_v0 = vld [vmem:[%s311_s3] sm:$0xff]  ;;  %209 = vmatprep.subr.bf16.mxu0 %v242_v2  ;;  %v55_v6 = vld [vmem:[%s311_s3 + $0x8] sm:$0xff]  ;;  %206 = vmatprep.mubr.msk.f32.mxu0 %vm243_vm0, %v244_v8 }
   0x2   :  { %v191_v1 = vld [vmem:[%s308_s0] sm:$0xff]   ;;  %56 = vxpose.xlu0.b32.start [1/2] (short) (narrow) %v54_v0, 8 }
   0x3   :  { %v192_v3 = vunpack.c.l.bf16 %v191_v1  ;;  %v193_v4 = vunpack.c.h.bf16 %v191_v1  ;;  %v183_v5 = vld [vmem:[%s309_s1] ss:$0 sm:$0xff] }
   0x4   :  { %v184_v7 = vld [vmem:[%s310_s2] ss:$0 sm:$0xff] }
   0x5   :  { %11 = vsyncpa [#allocation3], 0  ;;  %v31_v9 = vmul.f32 %v192_v3, %v183_v5  ;;  %v32_v10 = vmul.f32 %v193_v4, %v183_v5  ;;  %vm88_vm1 = vcmask 130048   ;;  %s245_s0 = smov [#allocation2]  }
   0x6   :  { %57 = vxpose.xlu0.b32.end [2/2] (short) (narrow) %v55_v6, 8  ;;  %s168_s1 = sshll.u32 %s245_s0, 4  ;;  %s169_s1 = int_to_ptr.vmem [resolvable:$true] %s168_s1 }
   0x7   :  { %v40_v11 = vadd.f32 %v184_v7, %v31_v9  ;;  %v41_v12 = vadd.f32 %v184_v7, %v32_v10  ;;  %s218_s2 = scalar_lea.vmem %s169_s1, 128  ;;  %p223_p1 = scmp.lt.s32.totalorder %s169_s1, %s169_s1 }
   0x8   :  { %p219_p0 = scmp.ne.s32.totalorder %s169_s1, %s218_s2  ;;  %p224_p2 = scmp.lt.s32.totalorder %s218_s2, %s218_s2 }
   0x9   :  { %v42_v13 = vmax.f32 %v40_v11, 0.0  ;;  %v43_v14 = vmax.f32 %v41_v12, 0.0 }
   0xa   :  { %p225_p3 = por %p224_p2, %p223_p1 }
   0xb   :  { %v197_v15 = vpack.c.bf16 %v43_v14, %v42_v13 }
   0xc   :  { %p226_p4 = pnand %p225_p3, %p219_p0 }
   0xd   :  { %198 = vst [vmem:[#allocation2] sm:$0xff] %v197_v15   ;;  %211 = vmatpush3.bf16.msra.mxu0 %v197_v15 }
  0x82   :  { %v72_v16 = vpop.trf.xlu0 }
  0x83   :  { %207 = vmatmul.mubr.msk.f32.vlgmr.msra.gmra.mrb[0].mxu0 %vm88_vm1, %v72_v16 }
  0x84   :  { %229 = shalt.err (!%p226_p4)
}
  0x85   :  { %s230_s29 = scalar_lea.hbm %s312_s4, 128 }
  0x86   :  { %p231_p5 = scmp.ne.s32.totalorder %s312_s4, %s230_s29  ;;  %p234_p6 = scmp.lt.u32.totalorder %s230_s29, %s312_s4 }
  0x88   :  { %p236_p7 = pnand %p234_p6, %p231_p5 }
  0x8a   :  { %239 = shalt.err (!%p236_p7)
}
  0x8b   :  { %s246_s9 = smov 64   ;;  %s247_s10 = smov 4  }
  0x8c   :  { %174 = dma.vmem_to_hbm [thread:$0]  %s169_s1, 128, %s312_s4, [#allocation3], %s246_s9, %s246_s9, %s247_s10  }
 0x156   :  { %v158_v17 = vpop.f32.mrb[0].mxu0 }
 0x157   :  { %162 = vst [vmem:[%s313_s5] sm:$0xff] %v158_v17  ;;  %v208_v18 = vpop.f32.mrb[1].mxu0 }
 0x158   :  { %240 = dma.done.wait [#allocation3], 128  }
 0x159   :  { %241 = vsyncadd [#allocation3], 4294967168 }
 0x15a   :  { %182 = vsyncpa [#allocation3], 1 }

// kernel: gin_cnn_forward.16
= control target key start
LH: loop header
LB: loop body
LE: loop exit
PB: predicated region body
PF: predicated region fallthrough
CT: control target
= control target key end

     0   :  { %v197_v0 = vmov 0.0   ;;  %vm198_vm0 = vmmov 0   ;;  %s244_s1 = inlined_call_operand.vmem [shape: bf16[128,128], index: 1, kind: input, shape index: {}]   ;;  %s245_s0 = inlined_call_operand.vmem [shape: bf16[16,128], index: 0, kind: input, shape index: {}]   ;;  %s246_s2 = inlined_call_operand.vmem [shape: bf16[16,128], index: 2, kind: output, shape index: {}]  }
   0x1   :  { %166 = vmatprep.subr.bf16.mxu0 %v197_v0  ;;  %v188_v1 = vld [vmem:[%s244_s1] sm:$0xff]   ;;  %182 = vmatprep.mubr.msk.bf16.mxu0 %vm198_vm0, %v197_v0  ;;  %v189_v2 = vld [vmem:[%s244_s1 + $0x8] sm:$0xff]   ;;  %v190_v3 = vld [vmem:[%s244_s1 + $0x10] sm:$0xff]  }
   0x2   :  { %167 = vmatpush3.bf16.msra.mxu0 %v188_v1  ;;  %v191_v4 = vld [vmem:[%s244_s1 + $0x18] sm:$0xff]   ;;  %v192_v5 = vld [vmem:[%s244_s1 + $0x20] sm:$0xff]   ;;  %v193_v6 = vld [vmem:[%s244_s1 + $0x28] sm:$0xff]  }
   0x3   :  { %168 = vmatprep.subr.bf16.mxu0 %v197_v0  ;;  %v194_v7 = vld [vmem:[%s244_s1 + $0x30] sm:$0xff]   ;;  %v195_v8 = vld [vmem:[%s244_s1 + $0x38] sm:$0xff]   ;;  %v196_v9 = vld [vmem:[%s245_s0] sm:$0xff]  }
   0x6   :  { %169 = vmatpush3.bf16.msra.mxu0 %v189_v2 }
   0x7   :  { %170 = vmatprep.subr.bf16.mxu0 %v197_v0 }
   0xa   :  { %171 = vmatpush3.bf16.msra.mxu0 %v190_v3 }
   0xb   :  { %172 = vmatprep.subr.bf16.mxu0 %v197_v0 }
   0xe   :  { %173 = vmatpush3.bf16.msra.mxu0 %v191_v4 }
   0xf   :  { %174 = vmatprep.subr.bf16.mxu0 %v197_v0 }
  0x12   :  { %175 = vmatpush3.bf16.msra.mxu0 %v192_v5 }
  0x13   :  { %176 = vmatprep.subr.bf16.mxu0 %v197_v0 }
  0x16   :  { %177 = vmatpush3.bf16.msra.mxu0 %v193_v6 }
  0x17   :  { %178 = vmatprep.subr.bf16.mxu0 %v197_v0 }
  0x1a   :  { %179 = vmatpush3.bf16.msra.mxu0 %v194_v7 }
  0x1b   :  { %180 = vmatprep.subr.bf16.mxu0 %v197_v0 }
  0x1e   :  { %181 = vmatpush3.bf16.msra.mxu0 %v195_v8 }
  0x21   :  { %183 = vmatmul.mubr.bf16.vlgmr.msra.gmra.mrb[0].mxu0 %v196_v9 }
  0xf4   :  { %v118_v10 = vpop.f32.mrb[0].mxu0 }
  0xf5   :  { %v184_v11 = vpop.f32.mrb[1].mxu0 }
  0xf6   :  { %v121_v12 = vpop.f32.mrb[2].mxu0 }
  0xf7   :  { %v155_v13 = vpack.c.bf16 %v121_v12, %v118_v10  ;;  %v185_v14 = vpop.f32.mrb[3].mxu0 }
  0xf9   :  { %156 = vst [vmem:[%s246_s2] sm:$0xff] %v155_v13  }

</bundles_post_ra>
